<compile_context>
chip_gen: v6e
topology: v6e:2x2x1
jax: 0.10.0
libtpu: 0.0.40
codegen_flags: <defaults>
</compile_context>

<pallas_src>
import math
import functools

import jax
import jax.numpy as jnp
from jax.experimental import pallas as pl
from jax.experimental.pallas import tpu as pltpu


def _cross_attn_kernel(x_ref, k_ref, v_ref, mask_ref,
                       wq_ref, bq_ref, wo_ref, bo_ref,
                       out_ref, o_acc, *, n_heads, d_head):
    """One (batch, query-tile) step of fused cross-attention.

    x_ref:    (1, TQ, D)      compute dtype (bf16 on the fast path)
    k_ref:    (1, Lk_pad, D)  precomputed K projection
    v_ref:    (1, Lk_pad, D)  precomputed V projection
    mask_ref: (1, Lk_pad)     f32 additive mask (0 = valid key, -1e30 = pad)
    wq_ref:   (D, D)  scaled by 1/sqrt(d_head);   bq_ref: (1, D) f32 (scaled)
    wo_ref:   (D, D);                             bo_ref: (1, D) f32
    out_ref:  (1, TQ, D)
    o_acc:    (TQ, D) f32 VMEM scratch holding the merged per-head outputs
    """
    cdt = x_ref.dtype
    x = x_ref[0]                                   # (TQ, D)

    # Q projection: MXU in input dtype, f32 accumulation, f32 bias add.
    # The 1/sqrt(d_head) scale is already folded into wq/bq by the wrapper.
    q = jnp.dot(x, wq_ref[...], preferred_element_type=jnp.float32) + bq_ref[...]
    q = q.astype(cdt)

    k = k_ref[0]                                   # (Lk_pad, D) compute dtype
    v = v_ref[0]                                   # (Lk_pad, D) compute dtype
    mask = mask_ref[...]                           # (1, Lk_pad) f32

    # Per-head attention via lane slicing — no (H, L, Dh) transposes.
    # TODO(synk): SD d_head in {40, 64, 80, 160} makes these slices lane-
    #   misaligned; padding d_head per head to 128 in the wrapper would give
    #   aligned, dense MXU feeds at the cost of extra attention FLOPs.
    for h in range(n_heads):                       # static unrolled loop
        sl = slice(h * d_head, (h + 1) * d_head)
        qh = q[:, sl]                              # (TQ, dh)
        kh = k[:, sl]                              # (Lk_pad, dh)
        vh = v[:, sl]                              # (Lk_pad, dh)

        s = jnp.einsum('qd,kd->qk', qh, kh,
                       preferred_element_type=jnp.float32)   # (TQ, Lk_pad) f32
        s = s + mask                               # kill padded key columns
        m = jnp.max(s, axis=-1, keepdims=True)
        p = jnp.exp(s - m)                         # f32, unnormalized
        rowsum = jnp.sum(p, axis=-1, keepdims=True)           # (TQ, 1) f32

        oh = jnp.dot(p.astype(cdt), vh,
                     preferred_element_type=jnp.float32)      # (TQ, dh) f32
        # Normalize after PV: divide the small (TQ, dh) tensor via EUP rcp.
        o_acc[:, sl] = oh * pl.reciprocal(rowsum, approx=True)

    out = jnp.dot(o_acc[...].astype(cdt), wo_ref[...],
                  preferred_element_type=jnp.float32) + bo_ref[...]
    out_ref[0] = out.astype(out_ref.dtype)


def cross_attention(x, y, params, *, n_heads, tq_max=None):
    """x: (B, Lq, D), y: (B, Lk, Dc). params: PyTorch-layout weights.

    Matmuls run in x.dtype (pass bf16 inputs for the fast MXU path);
    accumulation, softmax statistics and bias adds are f32.
    """
    B, Lq, D = x.shape
    _, Lk, Dc = y.shape
    assert D % n_heads == 0, "d_embed must be divisible by n_heads"
    d_head = D // n_heads
    scale = 1.0 / math.sqrt(d_head)
    cdt = x.dtype
    itemsize = jnp.dtype(cdt).itemsize

    # ---- per-generation VMEM budget and query-tile size -------------------
    try:
        info = pltpu.get_tpu_info()
        vmem_cap = int(getattr(info, "vmem_capacity_bytes", 128 * 1024 * 1024))
    except Exception:
        vmem_cap = 128 * 1024 * 1024
    if tq_max is None:
        # v7x: 64 MiB VMEM per TC -> smaller tiles; v5e/v6e: 128 MiB -> bigger.
        tq_max = 256 if vmem_cap <= 64 * 1024 * 1024 else 512

    # ---- weights: nn.Linear is (out, in) -> transpose to (in, out).
    # Fold the 1/sqrt(d_head) attention scale into the Q projection.
    wq = (params["wq"].T * scale).astype(cdt)
    wo = params["wo"].T.astype(cdt)
    bq = (params["bq"] * scale).astype(jnp.float32).reshape(1, D)
    bo = params["bo"].astype(jnp.float32).reshape(1, D)

    # ---- K/V projections hoisted out of the query-tile grid (plain XLA GEMM,
    # f32 accumulation, cast back to the compute dtype for the MXU feeds).
    yc = y.astype(cdt)
    wk = params["wk"].T.astype(cdt)
    wv = params["wv"].T.astype(cdt)
    bk = params["bk"].astype(jnp.float32)
    bv = params["bv"].astype(jnp.float32)
    k = (jnp.einsum('blc,cd->bld', yc, wk,
                    preferred_element_type=jnp.float32) + bk).astype(cdt)
    v = (jnp.einsum('blc,cd->bld', yc, wv,
                    preferred_element_type=jnp.float32) + bv).astype(cdt)

    # ---- pad Lk to a lane-dense multiple of 128; mask padded keys to -1e30.
    Lk_pad = ((Lk + 127) // 128) * 128
    if Lk_pad != Lk:
        k = jnp.pad(k, ((0, 0), (0, Lk_pad - Lk), (0, 0)))
        v = jnp.pad(v, ((0, 0), (0, Lk_pad - Lk), (0, 0)))
    mask = jnp.where(jnp.arange(Lk_pad) < Lk, 0.0, -1e30)
    mask = mask.astype(jnp.float32).reshape(1, Lk_pad)

    # ---- query tiling ------------------------------------------------------
    TQ = Lq if Lq <= tq_max else tq_max
    n_q = pl.cdiv(Lq, TQ)

    # ---- derive a VMEM limit from the actual buffer sizes ------------------
    per_step_bytes = (
        2 * TQ * D * itemsize            # x tile (double-buffered)
        + 2 * TQ * D * itemsize          # out tile (double-buffered)
        + 2 * 2 * Lk_pad * D * itemsize  # k, v (double-buffered)
        + Lk_pad * 4                     # mask (single-buffered)
        + 2 * D * D * itemsize           # wq, wo (single-buffered)
        + 2 * D * 4                      # bq, bo
        + TQ * D * 4                     # o_acc scratch
        + 3 * TQ * D * 4                 # q / out f32 intermediates (slack)
        + 2 * TQ * Lk_pad * 4            # s, p f32
    )
    vmem_limit = int(per_step_bytes * 1.5) + (8 << 20)   # compiler scratch slack
    vmem_limit = max(vmem_limit, 32 << 20)
    vmem_limit = min(vmem_limit, vmem_cap - (16 << 20))

    # ---- cost estimate so XLA can overlap surrounding UNet ops -------------
    flops = 2 * B * Lq * D * (2 * D + 2 * Lk_pad)          # Q/O proj + QK + PV
    transcendentals = B * n_heads * Lq * Lk_pad            # exp
    bytes_accessed = (
        2 * B * Lq * D * itemsize                          # x in, out
        + 2 * B * Lk_pad * D * itemsize                    # k, v
        + 2 * D * D * itemsize + 2 * D * 4 + Lk_pad * 4    # weights/biases/mask
    )
    cost = pl.CostEstimate(flops=int(flops),
                           transcendentals=int(transcendentals),
                           bytes_accessed=int(bytes_accessed))

    kernel = functools.partial(_cross_attn_kernel, n_heads=n_heads, d_head=d_head)

    def build_call(use_buffered):
        def inv(shape):
            # Grid-invariant operand: constant index map -> DMA'd once;
            # single-buffered to avoid paying 2x VMEM for data that never changes.
            nd = len(shape)
            imap = lambda b, qi: (0,) * nd
            if use_buffered:
                return pl.BlockSpec(shape, imap, pipeline_mode=pl.Buffered(1))
            return pl.BlockSpec(shape, imap)

        return pl.pallas_call(
            kernel,
            out_shape=jax.ShapeDtypeStruct((B, Lq, D), x.dtype),
            grid_spec=pltpu.PrefetchScalarGridSpec(
                num_scalar_prefetch=0,
                grid=(B, n_q),
                in_specs=[
                    pl.BlockSpec((1, TQ, D), lambda b, qi: (b, qi, 0)),     # x tile
                    pl.BlockSpec((1, Lk_pad, D), lambda b, qi: (b, 0, 0)),  # K (per batch)
                    pl.BlockSpec((1, Lk_pad, D), lambda b, qi: (b, 0, 0)),  # V (per batch)
                    inv((1, Lk_pad)),   # key mask
                    inv((D, D)),        # wq (scaled)
                    inv((1, D)),        # bq (scaled)
                    inv((D, D)),        # wo
                    inv((1, D)),        # bo
                ],
                out_specs=pl.BlockSpec((1, TQ, D), lambda b, qi: (b, qi, 0)),
                scratch_shapes=[pltpu.VMEM((TQ, D), jnp.float32)],
            ),
            compiler_params=pltpu.CompilerParams(
                # K/V are precomputed in the wrapper, so both grid axes are
                # independent -> safe to shard across v7x's two TensorCores.
                dimension_semantics=("parallel", "parallel"),
                vmem_limit_bytes=int(vmem_limit)),
            cost_estimate=cost,
        )

    args = (x, k, v, mask, wq, bq, wo, bo)
    try:
        return build_call(use_buffered=True)(*args)
    except Exception:
        # Fallback for JAX versions that reject single-buffered pipeline_mode.
        return build_call(use_buffered=False)(*args)


def _reference(x, y, params, *, n_heads):
    """Pure-JAX f32 reference mirroring the PyTorch forward exactly."""
    B, Lq, D = x.shape
    d_head = D // n_heads
    q = x @ params["wq"].T + params["bq"]
    k = y @ params["wk"].T + params["bk"]
    v = y @ params["wv"].T + params["bv"]

    def split(t):
        return t.reshape(B, -1, n_heads, d_head).transpose(0, 2, 1, 3)

    qh, kh, vh = split(q), split(k), split(v)
    s = jnp.einsum('bhqd,bhkd->bhqk', qh, kh) / math.sqrt(d_head)
    p = jax.nn.softmax(s, axis=-1)
    o = jnp.einsum('bhqk,bhkd->bhqd', p, vh)
    o = o.transpose(0, 2, 1, 3).reshape(B, Lq, D)
    return o @ params["wo"].T + params["bo"]


def _init_params(key, d_embed, d_cross):
    """Deterministic init matching nn.Linear shapes (weight: (out, in))."""
    ks = jax.random.split(key, 8)

    def lin(kw, kb, out_f, in_f):
        bound = 1.0 / math.sqrt(in_f)
        w = jax.random.uniform(kw, (out_f, in_f), jnp.float32, -bound, bound)
        b = jax.random.uniform(kb, (out_f,), jnp.float32, -bound, bound)
        return w, b

    wq, bq = lin(ks[0], ks[1], d_embed, d_embed)
    wk, bk = lin(ks[2], ks[3], d_embed, d_cross)
    wv, bv = lin(ks[4], ks[5], d_embed, d_cross)
    wo, bo = lin(ks[6], ks[7], d_embed, d_embed)
    return dict(wq=wq, bq=bq, wk=wk, bk=bk, wv=wv, bv=bv, wo=wo, bo=bo)


if __name__ == "__main__":
    # Small shapes consistent with the module's forward.
    batch, seq_q, seq_kv = 2, 8, 8
    n_heads, d_embed, d_cross = 4, 32, 16

    key = jax.random.PRNGKey(0)
    kx, ky, kp = jax.random.split(key, 3)
    x = jax.random.normal(kx, (batch, seq_q, d_embed), jnp.float32)
    y = jax.random.normal(ky, (batch, seq_kv, d_cross), jnp.float32)
    params = _init_params(kp, d_embed, d_cross)

    ref = _reference(x, y, params, n_heads=n_heads)

    # f32 path (tolerance slightly relaxed vs. exact ref because the kernel
    # uses the approximate EUP reciprocal for the softmax denominator).
    out = cross_attention(x, y, params, n_heads=n_heads)
    out = jax.block_until_ready(out)
    assert out.shape == (batch, seq_q, d_embed)
    assert jnp.allclose(out, ref, atol=2e-3, rtol=2e-3), "f32 mismatch vs reference"

    # bf16 fast path (native MXU input format) — sanity check vs f32 ref.
    out_bf16 = cross_attention(x.astype(jnp.bfloat16), y.astype(jnp.bfloat16),
                               params, n_heads=n_heads)
    out_bf16 = jax.block_until_ready(out_bf16)
    assert out_bf16.dtype == jnp.bfloat16
    assert jnp.allclose(out_bf16.astype(jnp.float32), ref, atol=1e-1, rtol=1e-1), \
        "bf16 mismatch vs reference"

    print("KERNEL_OK")
</pallas_src>

<mosaic_0001>
module attributes {stable_mosaic.version = 11 : i64} {
  func.func @_cross_attn_kernel(%arg0: i32, %arg1: i32, %arg2: memref<1x8x32xf32, #tpu.memory_space<vmem>>, %arg3: memref<1x128x32xf32, #tpu.memory_space<vmem>>, %arg4: memref<1x128x32xf32, #tpu.memory_space<vmem>>, %arg5: memref<1x128xf32, #tpu.memory_space<vmem>>, %arg6: memref<32x32xf32, #tpu.memory_space<vmem>>, %arg7: memref<1x32xf32, #tpu.memory_space<vmem>>, %arg8: memref<32x32xf32, #tpu.memory_space<vmem>>, %arg9: memref<1x32xf32, #tpu.memory_space<vmem>>, %arg10: memref<1x8x32xf32, #tpu.memory_space<vmem>>, %arg11: memref<8x32xf32, #tpu.memory_space<vmem>>) attributes {dimension_semantics = [#tpu.dimension_semantics<parallel>, #tpu.dimension_semantics<parallel>], iteration_bounds = array<i64: 2, 1>, scalar_prefetch = 0 : i64, scratch_operands = 1 : i64, tpu.core_type = #tpu.core_type<tc>, window_params = [{transform_indices = @transform_0, window_bounds = array<i64: 1, 8, 32>}, {transform_indices = @transform_1, window_bounds = array<i64: 1, 128, 32>}, {transform_indices = @transform_2, window_bounds = array<i64: 1, 128, 32>}, {pipeline_mode = #tpu.pipeline_mode<synchronous>, transform_indices = @transform_3, window_bounds = array<i64: 1, 128>}, {pipeline_mode = #tpu.pipeline_mode<synchronous>, transform_indices = @transform_4, window_bounds = array<i64: 32, 32>}, {pipeline_mode = #tpu.pipeline_mode<synchronous>, transform_indices = @transform_5, window_bounds = array<i64: 1, 32>}, {pipeline_mode = #tpu.pipeline_mode<synchronous>, transform_indices = @transform_6, window_bounds = array<i64: 32, 32>}, {pipeline_mode = #tpu.pipeline_mode<synchronous>, transform_indices = @transform_7, window_bounds = array<i64: 1, 32>}, {transform_indices = @transform_8, window_bounds = array<i64: 1, 8, 32>}]} {
    %c0 = arith.constant 0 : index
    %c0_0 = arith.constant 0 : index
    %c0_1 = arith.constant 0 : index
    %0 = vector.load %arg2[%c0, %c0_0, %c0_1] : memref<1x8x32xf32, #tpu.memory_space<vmem>>, vector<1x8x32xf32>
    %1 = vector.shape_cast %0 : vector<1x8x32xf32> to vector<8x32xf32>
    %c0_2 = arith.constant 0 : index
    %c0_3 = arith.constant 0 : index
    %2 = vector.load %arg6[%c0_2, %c0_3] : memref<32x32xf32, #tpu.memory_space<vmem>>, vector<32x32xf32>
    %cst = arith.constant dense<0.000000e+00> : vector<8x32xf32>
    %3 = tpu.matmul %1, %2, %cst {dimension_numbers = #tpu.dot_dimension_numbers<[1], [0], [0], [1], [0, 0, 1, 1], [], []>} : vector<8x32xf32>, vector<32x32xf32>, vector<8x32xf32> -> vector<8x32xf32>
    %c0_4 = arith.constant 0 : index
    %c0_5 = arith.constant 0 : index
    %4 = vector.load %arg7[%c0_4, %c0_5] : memref<1x32xf32, #tpu.memory_space<vmem>>, vector<1x32xf32>
    %5 = vector.broadcast %4 : vector<1x32xf32> to vector<8x32xf32>
    %6 = arith.addf %3, %5 : vector<8x32xf32>
    %c0_6 = arith.constant 0 : index
    %c0_7 = arith.constant 0 : index
    %c0_8 = arith.constant 0 : index
    %7 = vector.load %arg3[%c0_6, %c0_7, %c0_8] : memref<1x128x32xf32, #tpu.memory_space<vmem>>, vector<1x128x32xf32>
    %8 = vector.shape_cast %7 : vector<1x128x32xf32> to vector<128x32xf32>
    %c0_9 = arith.constant 0 : index
    %c0_10 = arith.constant 0 : index
    %c0_11 = arith.constant 0 : index
    %9 = vector.load %arg4[%c0_9, %c0_10, %c0_11] : memref<1x128x32xf32, #tpu.memory_space<vmem>>, vector<1x128x32xf32>
    %10 = vector.shape_cast %9 : vector<1x128x32xf32> to vector<128x32xf32>
    %c0_12 = arith.constant 0 : index
    %c0_13 = arith.constant 0 : index
    %11 = vector.load %arg5[%c0_12, %c0_13] : memref<1x128xf32, #tpu.memory_space<vmem>>, vector<1x128xf32>
    %12 = vector.extract_strided_slice %6 {offsets = [0, 0], sizes = [8, 8], strides = [1, 1]} : vector<8x32xf32> to vector<8x8xf32>
    %13 = vector.extract_strided_slice %8 {offsets = [0, 0], sizes = [128, 8], strides = [1, 1]} : vector<128x32xf32> to vector<128x8xf32>
    %14 = vector.extract_strided_slice %10 {offsets = [0, 0], sizes = [128, 8], strides = [1, 1]} : vector<128x32xf32> to vector<128x8xf32>
    "tpu.trace_start"() <{level = 10 : i32, message = "qd,kd->qk"}> : () -> ()
    %cst_14 = arith.constant dense<0.000000e+00> : vector<8x128xf32>
    %15 = tpu.matmul %12, %13, %cst_14 {dimension_numbers = #tpu.dot_dimension_numbers<[1], [1], [0], [0], [0, 0, 1, 0], [], []>} : vector<8x8xf32>, vector<128x8xf32>, vector<8x128xf32> -> vector<8x128xf32>
    "tpu.trace_stop"() : () -> ()
    %16 = vector.broadcast %11 : vector<1x128xf32> to vector<8x128xf32>
    %17 = arith.addf %15, %16 : vector<8x128xf32>
    %cst_15 = arith.constant dense<0xFF800000> : vector<8xf32>
    %18 = vector.multi_reduction <maximumf>, %17, %cst_15 [1] : vector<8x128xf32> to vector<8xf32>
    %19 = vector.shape_cast %18 : vector<8xf32> to vector<8x1xf32>
    %20 = vector.broadcast %19 : vector<8x1xf32> to vector<8x128xf32>
    %21 = arith.subf %17, %20 : vector<8x128xf32>
    %22 = math.exp %21 : vector<8x128xf32>
    %cst_16 = arith.constant dense<0.000000e+00> : vector<8xf32>
    %23 = vector.multi_reduction <add>, %22, %cst_16 [1] : vector<8x128xf32> to vector<8xf32>
    %24 = vector.shape_cast %23 : vector<8xf32> to vector<8x1xf32>
    %cst_17 = arith.constant dense<0.000000e+00> : vector<8x8xf32>
    %25 = tpu.matmul %22, %14, %cst_17 {dimension_numbers = #tpu.dot_dimension_numbers<[1], [0], [0], [1], [0, 0, 1, 1], [], []>} : vector<8x128xf32>, vector<128x8xf32>, vector<8x8xf32> -> vector<8x8xf32>
    %26 = tpu.reciprocal %24 {approx = true} : vector<8x1xf32> -> vector<8x1xf32>
    %27 = vector.broadcast %26 : vector<8x1xf32> to vector<8x8xf32>
    %28 = arith.mulf %25, %27 : vector<8x8xf32>
    %c0_18 = arith.constant 0 : index
    %c0_19 = arith.constant 0 : index
    %29 = vector.load %arg11[%c0_18, %c0_19] : memref<8x32xf32, #tpu.memory_space<vmem>>, vector<8x8xf32>
    tpu.vector_store %arg11[%c0_18, %c0_19], %28 {strides = array<i32>} : memref<8x32xf32, #tpu.memory_space<vmem>>, vector<8x8xf32>,
    %30 = vector.extract_strided_slice %6 {offsets = [0, 8], sizes = [8, 8], strides = [1, 1]} : vector<8x32xf32> to vector<8x8xf32>
    %31 = vector.extract_strided_slice %8 {offsets = [0, 8], sizes = [128, 8], strides = [1, 1]} : vector<128x32xf32> to vector<128x8xf32>
    %32 = vector.extract_strided_slice %10 {offsets = [0, 8], sizes = [128, 8], strides = [1, 1]} : vector<128x32xf32> to vector<128x8xf32>
    "tpu.trace_start"() <{level = 10 : i32, message = "qd,kd->qk"}> : () -> ()
    %cst_20 = arith.constant dense<0.000000e+00> : vector<8x128xf32>
    %33 = tpu.matmul %30, %31, %cst_20 {dimension_numbers = #tpu.dot_dimension_numbers<[1], [1], [0], [0], [0, 0, 1, 0], [], []>} : vector<8x8xf32>, vector<128x8xf32>, vector<8x128xf32> -> vector<8x128xf32>
    "tpu.trace_stop"() : () -> ()
    %34 = vector.broadcast %11 : vector<1x128xf32> to vector<8x128xf32>
    %35 = arith.addf %33, %34 : vector<8x128xf32>
    %cst_21 = arith.constant dense<0xFF800000> : vector<8xf32>
    %36 = vector.multi_reduction <maximumf>, %35, %cst_21 [1] : vector<8x128xf32> to vector<8xf32>
    %37 = vector.shape_cast %36 : vector<8xf32> to vector<8x1xf32>
    %38 = vector.broadcast %37 : vector<8x1xf32> to vector<8x128xf32>
    %39 = arith.subf %35, %38 : vector<8x128xf32>
    %40 = math.exp %39 : vector<8x128xf32>
    %cst_22 = arith.constant dense<0.000000e+00> : vector<8xf32>
    %41 = vector.multi_reduction <add>, %40, %cst_22 [1] : vector<8x128xf32> to vector<8xf32>
    %42 = vector.shape_cast %41 : vector<8xf32> to vector<8x1xf32>
    %cst_23 = arith.constant dense<0.000000e+00> : vector<8x8xf32>
    %43 = tpu.matmul %40, %32, %cst_23 {dimension_numbers = #tpu.dot_dimension_numbers<[1], [0], [0], [1], [0, 0, 1, 1], [], []>} : vector<8x128xf32>, vector<128x8xf32>, vector<8x8xf32> -> vector<8x8xf32>
    %44 = tpu.reciprocal %42 {approx = true} : vector<8x1xf32> -> vector<8x1xf32>
    %45 = vector.broadcast %44 : vector<8x1xf32> to vector<8x8xf32>
    %46 = arith.mulf %43, %45 : vector<8x8xf32>
    %c0_24 = arith.constant 0 : index
    %c8 = arith.constant 8 : index
    %47 = vector.load %arg11[%c0_24, %c8] : memref<8x32xf32, #tpu.memory_space<vmem>>, vector<8x8xf32>
    tpu.vector_store %arg11[%c0_24, %c8], %46 {strides = array<i32>} : memref<8x32xf32, #tpu.memory_space<vmem>>, vector<8x8xf32>,
    %48 = vector.extract_strided_slice %6 {offsets = [0, 16], sizes = [8, 8], strides = [1, 1]} : vector<8x32xf32> to vector<8x8xf32>
    %49 = vector.extract_strided_slice %8 {offsets = [0, 16], sizes = [128, 8], strides = [1, 1]} : vector<128x32xf32> to vector<128x8xf32>
    %50 = vector.extract_strided_slice %10 {offsets = [0, 16], sizes = [128, 8], strides = [1, 1]} : vector<128x32xf32> to vector<128x8xf32>
    "tpu.trace_start"() <{level = 10 : i32, message = "qd,kd->qk"}> : () -> ()
    %cst_25 = arith.constant dense<0.000000e+00> : vector<8x128xf32>
    %51 = tpu.matmul %48, %49, %cst_25 {dimension_numbers = #tpu.dot_dimension_numbers<[1], [1], [0], [0], [0, 0, 1, 0], [], []>} : vector<8x8xf32>, vector<128x8xf32>, vector<8x128xf32> -> vector<8x128xf32>
    "tpu.trace_stop"() : () -> ()
    %52 = vector.broadcast %11 : vector<1x128xf32> to vector<8x128xf32>
    %53 = arith.addf %51, %52 : vector<8x128xf32>
    %cst_26 = arith.constant dense<0xFF800000> : vector<8xf32>
    %54 = vector.multi_reduction <maximumf>, %53, %cst_26 [1] : vector<8x128xf32> to vector<8xf32>
    %55 = vector.shape_cast %54 : vector<8xf32> to vector<8x1xf32>
    %56 = vector.broadcast %55 : vector<8x1xf32> to vector<8x128xf32>
    %57 = arith.subf %53, %56 : vector<8x128xf32>
    %58 = math.exp %57 : vector<8x128xf32>
    %cst_27 = arith.constant dense<0.000000e+00> : vector<8xf32>
    %59 = vector.multi_reduction <add>, %58, %cst_27 [1] : vector<8x128xf32> to vector<8xf32>
    %60 = vector.shape_cast %59 : vector<8xf32> to vector<8x1xf32>
    %cst_28 = arith.constant dense<0.000000e+00> : vector<8x8xf32>
    %61 = tpu.matmul %58, %50, %cst_28 {dimension_numbers = #tpu.dot_dimension_numbers<[1], [0], [0], [1], [0, 0, 1, 1], [], []>} : vector<8x128xf32>, vector<128x8xf32>, vector<8x8xf32> -> vector<8x8xf32>
    %62 = tpu.reciprocal %60 {approx = true} : vector<8x1xf32> -> vector<8x1xf32>
    %63 = vector.broadcast %62 : vector<8x1xf32> to vector<8x8xf32>
    %64 = arith.mulf %61, %63 : vector<8x8xf32>
    %c0_29 = arith.constant 0 : index
    %c16 = arith.constant 16 : index
    %65 = vector.load %arg11[%c0_29, %c16] : memref<8x32xf32, #tpu.memory_space<vmem>>, vector<8x8xf32>
    tpu.vector_store %arg11[%c0_29, %c16], %64 {strides = array<i32>} : memref<8x32xf32, #tpu.memory_space<vmem>>, vector<8x8xf32>,
    %66 = vector.extract_strided_slice %6 {offsets = [0, 24], sizes = [8, 8], strides = [1, 1]} : vector<8x32xf32> to vector<8x8xf32>
    %67 = vector.extract_strided_slice %8 {offsets = [0, 24], sizes = [128, 8], strides = [1, 1]} : vector<128x32xf32> to vector<128x8xf32>
    %68 = vector.extract_strided_slice %10 {offsets = [0, 24], sizes = [128, 8], strides = [1, 1]} : vector<128x32xf32> to vector<128x8xf32>
    "tpu.trace_start"() <{level = 10 : i32, message = "qd,kd->qk"}> : () -> ()
    %cst_30 = arith.constant dense<0.000000e+00> : vector<8x128xf32>
    %69 = tpu.matmul %66, %67, %cst_30 {dimension_numbers = #tpu.dot_dimension_numbers<[1], [1], [0], [0], [0, 0, 1, 0], [], []>} : vector<8x8xf32>, vector<128x8xf32>, vector<8x128xf32> -> vector<8x128xf32>
    "tpu.trace_stop"() : () -> ()
    %70 = vector.broadcast %11 : vector<1x128xf32> to vector<8x128xf32>
    %71 = arith.addf %69, %70 : vector<8x128xf32>
    %cst_31 = arith.constant dense<0xFF800000> : vector<8xf32>
    %72 = vector.multi_reduction <maximumf>, %71, %cst_31 [1] : vector<8x128xf32> to vector<8xf32>
    %73 = vector.shape_cast %72 : vector<8xf32> to vector<8x1xf32>
    %74 = vector.broadcast %73 : vector<8x1xf32> to vector<8x128xf32>
    %75 = arith.subf %71, %74 : vector<8x128xf32>
    %76 = math.exp %75 : vector<8x128xf32>
    %cst_32 = arith.constant dense<0.000000e+00> : vector<8xf32>
    %77 = vector.multi_reduction <add>, %76, %cst_32 [1] : vector<8x128xf32> to vector<8xf32>
    %78 = vector.shape_cast %77 : vector<8xf32> to vector<8x1xf32>
    %cst_33 = arith.constant dense<0.000000e+00> : vector<8x8xf32>
    %79 = tpu.matmul %76, %68, %cst_33 {dimension_numbers = #tpu.dot_dimension_numbers<[1], [0], [0], [1], [0, 0, 1, 1], [], []>} : vector<8x128xf32>, vector<128x8xf32>, vector<8x8xf32> -> vector<8x8xf32>
    %80 = tpu.reciprocal %78 {approx = true} : vector<8x1xf32> -> vector<8x1xf32>
    %81 = vector.broadcast %80 : vector<8x1xf32> to vector<8x8xf32>
    %82 = arith.mulf %79, %81 : vector<8x8xf32>
    %c0_34 = arith.constant 0 : index
    %c24 = arith.constant 24 : index
    %83 = vector.load %arg11[%c0_34, %c24] : memref<8x32xf32, #tpu.memory_space<vmem>>, vector<8x8xf32>
    tpu.vector_store %arg11[%c0_34, %c24], %82 {strides = array<i32>} : memref<8x32xf32, #tpu.memory_space<vmem>>, vector<8x8xf32>,
    %c0_35 = arith.constant 0 : index
    %c0_36 = arith.constant 0 : index
    %84 = vector.load %arg11[%c0_35, %c0_36] : memref<8x32xf32, #tpu.memory_space<vmem>>, vector<8x32xf32>
    %c0_37 = arith.constant 0 : index
    %c0_38 = arith.constant 0 : index
    %85 = vector.load %arg8[%c0_37, %c0_38] : memref<32x32xf32, #tpu.memory_space<vmem>>, vector<32x32xf32>
    %cst_39 = arith.constant dense<0.000000e+00> : vector<8x32xf32>
    %86 = tpu.matmul %84, %85, %cst_39 {dimension_numbers = #tpu.dot_dimension_numbers<[1], [0], [0], [1], [0, 0, 1, 1], [], []>} : vector<8x32xf32>, vector<32x32xf32>, vector<8x32xf32> -> vector<8x32xf32>
    %c0_40 = arith.constant 0 : index
    %c0_41 = arith.constant 0 : index
    %87 = vector.load %arg9[%c0_40, %c0_41] : memref<1x32xf32, #tpu.memory_space<vmem>>, vector<1x32xf32>
    %88 = vector.broadcast %87 : vector<1x32xf32> to vector<8x32xf32>
    %89 = arith.addf %86, %88 : vector<8x32xf32>
    %c0_42 = arith.constant 0 : index
    %c0_43 = arith.constant 0 : index
    %c0_44 = arith.constant 0 : index
    %90 = vector.load %arg10[%c0_42, %c0_43, %c0_44] : memref<1x8x32xf32, #tpu.memory_space<vmem>>, vector<1x8x32xf32>
    %91 = vector.shape_cast %90 : vector<1x8x32xf32> to vector<8x32xf32>
    %92 = vector.shape_cast %89 : vector<8x32xf32> to vector<1x8x32xf32>
    tpu.vector_store %arg10[%c0_42, %c0_43, %c0_44], %92 {strides = array<i32>} : memref<1x8x32xf32, #tpu.memory_space<vmem>>, vector<1x8x32xf32>,
    return
  }
  func.func @transform_0(%arg0: i32, %arg1: i32) -> (i32, i32, i32) {
    %c0_i32 = arith.constant 0 : i32
    %c0_i32_0 = arith.constant 0 : i32
    return %arg0, %arg1, %c0_i32 : i32, i32, i32
  }
  func.func @transform_1(%arg0: i32, %arg1: i32) -> (i32, i32, i32) {
    %c0_i32 = arith.constant 0 : i32
    %c0_i32_0 = arith.constant 0 : i32
    %c0_i32_1 = arith.constant 0 : i32
    return %arg0, %c0_i32, %c0_i32_0 : i32, i32, i32
  }
  func.func @transform_2(%arg0: i32, %arg1: i32) -> (i32, i32, i32) {
    %c0_i32 = arith.constant 0 : i32
    %c0_i32_0 = arith.constant 0 : i32
    %c0_i32_1 = arith.constant 0 : i32
    return %arg0, %c0_i32, %c0_i32_0 : i32, i32, i32
  }
  func.func @transform_3(%arg0: i32, %arg1: i32) -> (i32, i32) {
    %c0_i32 = arith.constant 0 : i32
    %c0_i32_0 = arith.constant 0 : i32
    %c0_i32_1 = arith.constant 0 : i32
    return %c0_i32, %c0_i32_0 : i32, i32
  }
  func.func @transform_4(%arg0: i32, %arg1: i32) -> (i32, i32) {
    %c0_i32 = arith.constant 0 : i32
    %c0_i32_0 = arith.constant 0 : i32
    %c0_i32_1 = arith.constant 0 : i32
    return %c0_i32, %c0_i32_0 : i32, i32
  }
  func.func @transform_5(%arg0: i32, %arg1: i32) -> (i32, i32) {
    %c0_i32 = arith.constant 0 : i32
    %c0_i32_0 = arith.constant 0 : i32
    %c0_i32_1 = arith.constant 0 : i32
    return %c0_i32, %c0_i32_0 : i32, i32
  }
  func.func @transform_6(%arg0: i32, %arg1: i32) -> (i32, i32) {
    %c0_i32 = arith.constant 0 : i32
    %c0_i32_0 = arith.constant 0 : i32
    %c0_i32_1 = arith.constant 0 : i32
    return %c0_i32, %c0_i32_0 : i32, i32
  }
  func.func @transform_7(%arg0: i32, %arg1: i32) -> (i32, i32) {
    %c0_i32 = arith.constant 0 : i32
    %c0_i32_0 = arith.constant 0 : i32
    %c0_i32_1 = arith.constant 0 : i32
    return %c0_i32, %c0_i32_0 : i32, i32
  }
  func.func @transform_8(%arg0: i32, %arg1: i32) -> (i32, i32, i32) {
    %c0_i32 = arith.constant 0 : i32
    %c0_i32_0 = arith.constant 0 : i32
    return %arg0, %arg1, %c0_i32 : i32, i32, i32
  }
}

module attributes {stable_mosaic.version = 11 : i64} {
  func.func @_cross_attn_kernel(%arg0: i32, %arg1: i32, %arg2: memref<1x8x32xf32, #tpu.memory_space<vmem>>, %arg3: memref<1x128x32xf32, #tpu.memory_space<vmem>>, %arg4: memref<1x128x32xf32, #tpu.memory_space<vmem>>, %arg5: memref<1x128xf32, #tpu.memory_space<vmem>>, %arg6: memref<32x32xf32, #tpu.memory_space<vmem>>, %arg7: memref<1x32xf32, #tpu.memory_space<vmem>>, %arg8: memref<32x32xf32, #tpu.memory_space<vmem>>, %arg9: memref<1x32xf32, #tpu.memory_space<vmem>>, %arg10: memref<1x8x32xf32, #tpu.memory_space<vmem>>, %arg11: memref<8x32xf32, #tpu.memory_space<vmem>>) attributes {dimension_semantics = [#tpu.dimension_semantics<parallel>, #tpu.dimension_semantics<parallel>], iteration_bounds = array<i64: 2, 1>, scalar_prefetch = 0 : i64, scratch_operands = 1 : i64, tpu.core_type = #tpu.core_type<tc>, window_params = [{transform_indices = @transform_0, window_bounds = array<i64: 1, 8, 32>}, {transform_indices = @transform_1, window_bounds = array<i64: 1, 128, 32>}, {transform_indices = @transform_2, window_bounds = array<i64: 1, 128, 32>}, {pipeline_mode = #tpu.pipeline_mode<synchronous>, transform_indices = @transform_3, window_bounds = array<i64: 1, 128>}, {pipeline_mode = #tpu.pipeline_mode<synchronous>, transform_indices = @transform_4, window_bounds = array<i64: 32, 32>}, {pipeline_mode = #tpu.pipeline_mode<synchronous>, transform_indices = @transform_5, window_bounds = array<i64: 1, 32>}, {pipeline_mode = #tpu.pipeline_mode<synchronous>, transform_indices = @transform_6, window_bounds = array<i64: 32, 32>}, {pipeline_mode = #tpu.pipeline_mode<synchronous>, transform_indices = @transform_7, window_bounds = array<i64: 1, 32>}, {transform_indices = @transform_8, window_bounds = array<i64: 1, 8, 32>}]} {
    %c0 = arith.constant 0 : index
    %c0_0 = arith.constant 0 : index
    %c0_1 = arith.constant 0 : index
    %0 = vector.load %arg2[%c0, %c0_0, %c0_1] : memref<1x8x32xf32, #tpu.memory_space<vmem>>, vector<1x8x32xf32>
    %1 = vector.shape_cast %0 : vector<1x8x32xf32> to vector<8x32xf32>
    %c0_2 = arith.constant 0 : index
    %c0_3 = arith.constant 0 : index
    %2 = vector.load %arg6[%c0_2, %c0_3] : memref<32x32xf32, #tpu.memory_space<vmem>>, vector<32x32xf32>
    %cst = arith.constant dense<0.000000e+00> : vector<8x32xf32>
    %3 = tpu.matmul %1, %2, %cst {dimension_numbers = #tpu.dot_dimension_numbers<[1], [0], [0], [1], [0, 0, 1, 1], [], []>} : vector<8x32xf32>, vector<32x32xf32>, vector<8x32xf32> -> vector<8x32xf32>
    %c0_4 = arith.constant 0 : index
    %c0_5 = arith.constant 0 : index
    %4 = vector.load %arg7[%c0_4, %c0_5] : memref<1x32xf32, #tpu.memory_space<vmem>>, vector<1x32xf32>
    %5 = vector.broadcast %4 : vector<1x32xf32> to vector<8x32xf32>
    %6 = arith.addf %3, %5 : vector<8x32xf32>
    %c0_6 = arith.constant 0 : index
    %c0_7 = arith.constant 0 : index
    %c0_8 = arith.constant 0 : index
    %7 = vector.load %arg3[%c0_6, %c0_7, %c0_8] : memref<1x128x32xf32, #tpu.memory_space<vmem>>, vector<1x128x32xf32>
    %8 = vector.shape_cast %7 : vector<1x128x32xf32> to vector<128x32xf32>
    %c0_9 = arith.constant 0 : index
    %c0_10 = arith.constant 0 : index
    %c0_11 = arith.constant 0 : index
    %9 = vector.load %arg4[%c0_9, %c0_10, %c0_11] : memref<1x128x32xf32, #tpu.memory_space<vmem>>, vector<1x128x32xf32>
    %10 = vector.shape_cast %9 : vector<1x128x32xf32> to vector<128x32xf32>
    %c0_12 = arith.constant 0 : index
    %c0_13 = arith.constant 0 : index
    %11 = vector.load %arg5[%c0_12, %c0_13] : memref<1x128xf32, #tpu.memory_space<vmem>>, vector<1x128xf32>
    %12 = vector.extract_strided_slice %6 {offsets = [0, 0], sizes = [8, 8], strides = [1, 1]} : vector<8x32xf32> to vector<8x8xf32>
    %13 = vector.extract_strided_slice %8 {offsets = [0, 0], sizes = [128, 8], strides = [1, 1]} : vector<128x32xf32> to vector<128x8xf32>
    %14 = vector.extract_strided_slice %10 {offsets = [0, 0], sizes = [128, 8], strides = [1, 1]} : vector<128x32xf32> to vector<128x8xf32>
    "tpu.trace_start"() <{level = 10 : i32, message = "qd,kd->qk"}> : () -> ()
    %cst_14 = arith.constant dense<0.000000e+00> : vector<8x128xf32>
    %15 = tpu.matmul %12, %13, %cst_14 {dimension_numbers = #tpu.dot_dimension_numbers<[1], [1], [0], [0], [0, 0, 1, 0], [], []>} : vector<8x8xf32>, vector<128x8xf32>, vector<8x128xf32> -> vector<8x128xf32>
    "tpu.trace_stop"() : () -> ()
    %16 = vector.broadcast %11 : vector<1x128xf32> to vector<8x128xf32>
    %17 = arith.addf %15, %16 : vector<8x128xf32>
    %cst_15 = arith.constant dense<0xFF800000> : vector<8xf32>
    %18 = vector.multi_reduction <maximumf>, %17, %cst_15 [1] : vector<8x128xf32> to vector<8xf32>
    %19 = vector.shape_cast %18 : vector<8xf32> to vector<8x1xf32>
    %20 = vector.broadcast %19 : vector<8x1xf32> to vector<8x128xf32>
    %21 = arith.subf %17, %20 : vector<8x128xf32>
    %22 = math.exp %21 : vector<8x128xf32>
    %cst_16 = arith.constant dense<0.000000e+00> : vector<8xf32>
    %23 = vector.multi_reduction <add>, %22, %cst_16 [1] : vector<8x128xf32> to vector<8xf32>
    %24 = vector.shape_cast %23 : vector<8xf32> to vector<8x1xf32>
    %cst_17 = arith.constant dense<0.000000e+00> : vector<8x8xf32>
    %25 = tpu.matmul %22, %14, %cst_17 {dimension_numbers = #tpu.dot_dimension_numbers<[1], [0], [0], [1], [0, 0, 1, 1], [], []>} : vector<8x128xf32>, vector<128x8xf32>, vector<8x8xf32> -> vector<8x8xf32>
    %26 = tpu.reciprocal %24 {approx = true} : vector<8x1xf32> -> vector<8x1xf32>
    %27 = vector.broadcast %26 : vector<8x1xf32> to vector<8x8xf32>
    %28 = arith.mulf %25, %27 : vector<8x8xf32>
    %c0_18 = arith.constant 0 : index
    %c0_19 = arith.constant 0 : index
    %29 = vector.load %arg11[%c0_18, %c0_19] : memref<8x32xf32, #tpu.memory_space<vmem>>, vector<8x8xf32>
    tpu.vector_store %arg11[%c0_18, %c0_19], %28 {strides = array<i32>} : memref<8x32xf32, #tpu.memory_space<vmem>>, vector<8x8xf32>,
    %30 = vector.extract_strided_slice %6 {offsets = [0, 8], sizes = [8, 8], strides = [1, 1]} : vector<8x32xf32> to vector<8x8xf32>
    %31 = vector.extract_strided_slice %8 {offsets = [0, 8], sizes = [128, 8], strides = [1, 1]} : vector<128x32xf32> to vector<128x8xf32>
    %32 = vector.extract_strided_slice %10 {offsets = [0, 8], sizes = [128, 8], strides = [1, 1]} : vector<128x32xf32> to vector<128x8xf32>
    "tpu.trace_start"() <{level = 10 : i32, message = "qd,kd->qk"}> : () -> ()
    %cst_20 = arith.constant dense<0.000000e+00> : vector<8x128xf32>
    %33 = tpu.matmul %30, %31, %cst_20 {dimension_numbers = #tpu.dot_dimension_numbers<[1], [1], [0], [0], [0, 0, 1, 0], [], []>} : vector<8x8xf32>, vector<128x8xf32>, vector<8x128xf32> -> vector<8x128xf32>
    "tpu.trace_stop"() : () -> ()
    %34 = vector.broadcast %11 : vector<1x128xf32> to vector<8x128xf32>
    %35 = arith.addf %33, %34 : vector<8x128xf32>
    %cst_21 = arith.constant dense<0xFF800000> : vector<8xf32>
    %36 = vector.multi_reduction <maximumf>, %35, %cst_21 [1] : vector<8x128xf32> to vector<8xf32>
    %37 = vector.shape_cast %36 : vector<8xf32> to vector<8x1xf32>
    %38 = vector.broadcast %37 : vector<8x1xf32> to vector<8x128xf32>
    %39 = arith.subf %35, %38 : vector<8x128xf32>
    %40 = math.exp %39 : vector<8x128xf32>
    %cst_22 = arith.constant dense<0.000000e+00> : vector<8xf32>
    %41 = vector.multi_reduction <add>, %40, %cst_22 [1] : vector<8x128xf32> to vector<8xf32>
    %42 = vector.shape_cast %41 : vector<8xf32> to vector<8x1xf32>
    %cst_23 = arith.constant dense<0.000000e+00> : vector<8x8xf32>
    %43 = tpu.matmul %40, %32, %cst_23 {dimension_numbers = #tpu.dot_dimension_numbers<[1], [0], [0], [1], [0, 0, 1, 1], [], []>} : vector<8x128xf32>, vector<128x8xf32>, vector<8x8xf32> -> vector<8x8xf32>
    %44 = tpu.reciprocal %42 {approx = true} : vector<8x1xf32> -> vector<8x1xf32>
    %45 = vector.broadcast %44 : vector<8x1xf32> to vector<8x8xf32>
    %46 = arith.mulf %43, %45 : vector<8x8xf32>
    %c0_24 = arith.constant 0 : index
    %c8 = arith.constant 8 : index
    %47 = vector.load %arg11[%c0_24, %c8] : memref<8x32xf32, #tpu.memory_space<vmem>>, vector<8x8xf32>
    tpu.vector_store %arg11[%c0_24, %c8], %46 {strides = array<i32>} : memref<8x32xf32, #tpu.memory_space<vmem>>, vector<8x8xf32>,
    %48 = vector.extract_strided_slice %6 {offsets = [0, 16], sizes = [8, 8], strides = [1, 1]} : vector<8x32xf32> to vector<8x8xf32>
    %49 = vector.extract_strided_slice %8 {offsets = [0, 16], sizes = [128, 8], strides = [1, 1]} : vector<128x32xf32> to vector<128x8xf32>
    %50 = vector.extract_strided_slice %10 {offsets = [0, 16], sizes = [128, 8], strides = [1, 1]} : vector<128x32xf32> to vector<128x8xf32>
    "tpu.trace_start"() <{level = 10 : i32, message = "qd,kd->qk"}> : () -> ()
    %cst_25 = arith.constant dense<0.000000e+00> : vector<8x128xf32>
    %51 = tpu.matmul %48, %49, %cst_25 {dimension_numbers = #tpu.dot_dimension_numbers<[1], [1], [0], [0], [0, 0, 1, 0], [], []>} : vector<8x8xf32>, vector<128x8xf32>, vector<8x128xf32> -> vector<8x128xf32>
    "tpu.trace_stop"() : () -> ()
    %52 = vector.broadcast %11 : vector<1x128xf32> to vector<8x128xf32>
    %53 = arith.addf %51, %52 : vector<8x128xf32>
    %cst_26 = arith.constant dense<0xFF800000> : vector<8xf32>
    %54 = vector.multi_reduction <maximumf>, %53, %cst_26 [1] : vector<8x128xf32> to vector<8xf32>
    %55 = vector.shape_cast %54 : vector<8xf32> to vector<8x1xf32>
    %56 = vector.broadcast %55 : vector<8x1xf32> to vector<8x128xf32>
    %57 = arith.subf %53, %56 : vector<8x128xf32>
    %58 = math.exp %57 : vector<8x128xf32>
    %cst_27 = arith.constant dense<0.000000e+00> : vector<8xf32>
    %59 = vector.multi_reduction <add>, %58, %cst_27 [1] : vector<8x128xf32> to vector<8xf32>
    %60 = vector.shape_cast %59 : vector<8xf32> to vector<8x1xf32>
    %cst_28 = arith.constant dense<0.000000e+00> : vector<8x8xf32>
    %61 = tpu.matmul %58, %50, %cst_28 {dimension_numbers = #tpu.dot_dimension_numbers<[1], [0], [0], [1], [0, 0, 1, 1], [], []>} : vector<8x128xf32>, vector<128x8xf32>, vector<8x8xf32> -> vector<8x8xf32>
    %62 = tpu.reciprocal %60 {approx = true} : vector<8x1xf32> -> vector<8x1xf32>
    %63 = vector.broadcast %62 : vector<8x1xf32> to vector<8x8xf32>
    %64 = arith.mulf %61, %63 : vector<8x8xf32>
    %c0_29 = arith.constant 0 : index
    %c16 = arith.constant 16 : index
    %65 = vector.load %arg11[%c0_29, %c16] : memref<8x32xf32, #tpu.memory_space<vmem>>, vector<8x8xf32>
    tpu.vector_store %arg11[%c0_29, %c16], %64 {strides = array<i32>} : memref<8x32xf32, #tpu.memory_space<vmem>>, vector<8x8xf32>,
    %66 = vector.extract_strided_slice %6 {offsets = [0, 24], sizes = [8, 8], strides = [1, 1]} : vector<8x32xf32> to vector<8x8xf32>
    %67 = vector.extract_strided_slice %8 {offsets = [0, 24], sizes = [128, 8], strides = [1, 1]} : vector<128x32xf32> to vector<128x8xf32>
    %68 = vector.extract_strided_slice %10 {offsets = [0, 24], sizes = [128, 8], strides = [1, 1]} : vector<128x32xf32> to vector<128x8xf32>
    "tpu.trace_start"() <{level = 10 : i32, message = "qd,kd->qk"}> : () -> ()
    %cst_30 = arith.constant dense<0.000000e+00> : vector<8x128xf32>
    %69 = tpu.matmul %66, %67, %cst_30 {dimension_numbers = #tpu.dot_dimension_numbers<[1], [1], [0], [0], [0, 0, 1, 0], [], []>} : vector<8x8xf32>, vector<128x8xf32>, vector<8x128xf32> -> vector<8x128xf32>
    "tpu.trace_stop"() : () -> ()
    %70 = vector.broadcast %11 : vector<1x128xf32> to vector<8x128xf32>
    %71 = arith.addf %69, %70 : vector<8x128xf32>
    %cst_31 = arith.constant dense<0xFF800000> : vector<8xf32>
    %72 = vector.multi_reduction <maximumf>, %71, %cst_31 [1] : vector<8x128xf32> to vector<8xf32>
    %73 = vector.shape_cast %72 : vector<8xf32> to vector<8x1xf32>
    %74 = vector.broadcast %73 : vector<8x1xf32> to vector<8x128xf32>
    %75 = arith.subf %71, %74 : vector<8x128xf32>
    %76 = math.exp %75 : vector<8x128xf32>
    %cst_32 = arith.constant dense<0.000000e+00> : vector<8xf32>
    %77 = vector.multi_reduction <add>, %76, %cst_32 [1] : vector<8x128xf32> to vector<8xf32>
    %78 = vector.shape_cast %77 : vector<8xf32> to vector<8x1xf32>
    %cst_33 = arith.constant dense<0.000000e+00> : vector<8x8xf32>
    %79 = tpu.matmul %76, %68, %cst_33 {dimension_numbers = #tpu.dot_dimension_numbers<[1], [0], [0], [1], [0, 0, 1, 1], [], []>} : vector<8x128xf32>, vector<128x8xf32>, vector<8x8xf32> -> vector<8x8xf32>
    %80 = tpu.reciprocal %78 {approx = true} : vector<8x1xf32> -> vector<8x1xf32>
    %81 = vector.broadcast %80 : vector<8x1xf32> to vector<8x8xf32>
    %82 = arith.mulf %79, %81 : vector<8x8xf32>
    %c0_34 = arith.constant 0 : index
    %c24 = arith.constant 24 : index
    %83 = vector.load %arg11[%c0_34, %c24] : memref<8x32xf32, #tpu.memory_space<vmem>>, vector<8x8xf32>
    tpu.vector_store %arg11[%c0_34, %c24], %82 {strides = array<i32>} : memref<8x32xf32, #tpu.memory_space<vmem>>, vector<8x8xf32>,
    %c0_35 = arith.constant 0 : index
    %c0_36 = arith.constant 0 : index
    %84 = vector.load %arg11[%c0_35, %c0_36] : memref<8x32xf32, #tpu.memory_space<vmem>>, vector<8x32xf32>
    %c0_37 = arith.constant 0 : index
    %c0_38 = arith.constant 0 : index
    %85 = vector.load %arg8[%c0_37, %c0_38] : memref<32x32xf32, #tpu.memory_space<vmem>>, vector<32x32xf32>
    %cst_39 = arith.constant dense<0.000000e+00> : vector<8x32xf32>
    %86 = tpu.matmul %84, %85, %cst_39 {dimension_numbers = #tpu.dot_dimension_numbers<[1], [0], [0], [1], [0, 0, 1, 1], [], []>} : vector<8x32xf32>, vector<32x32xf32>, vector<8x32xf32> -> vector<8x32xf32>
    %c0_40 = arith.constant 0 : index
    %c0_41 = arith.constant 0 : index
    %87 = vector.load %arg9[%c0_40, %c0_41] : memref<1x32xf32, #tpu.memory_space<vmem>>, vector<1x32xf32>
    %88 = vector.broadcast %87 : vector<1x32xf32> to vector<8x32xf32>
    %89 = arith.addf %86, %88 : vector<8x32xf32>
    %c0_42 = arith.constant 0 : index
    %c0_43 = arith.constant 0 : index
    %c0_44 = arith.constant 0 : index
    %90 = vector.load %arg10[%c0_42, %c0_43, %c0_44] : memref<1x8x32xf32, #tpu.memory_space<vmem>>, vector<1x8x32xf32>
    %91 = vector.shape_cast %90 : vector<1x8x32xf32> to vector<8x32xf32>
    %92 = vector.shape_cast %89 : vector<8x32xf32> to vector<1x8x32xf32>
    tpu.vector_store %arg10[%c0_42, %c0_43, %c0_44], %92 {strides = array<i32>} : memref<1x8x32xf32, #tpu.memory_space<vmem>>, vector<1x8x32xf32>,
    return
  }
  func.func @transform_0(%arg0: i32, %arg1: i32) -> (i32, i32, i32) {
    %c0_i32 = arith.constant 0 : i32
    %c0_i32_0 = arith.constant 0 : i32
    return %arg0, %arg1, %c0_i32 : i32, i32, i32
  }
  func.func @transform_1(%arg0: i32, %arg1: i32) -> (i32, i32, i32) {
    %c0_i32 = arith.constant 0 : i32
    %c0_i32_0 = arith.constant 0 : i32
    %c0_i32_1 = arith.constant 0 : i32
    return %arg0, %c0_i32, %c0_i32_0 : i32, i32, i32
  }
  func.func @transform_2(%arg0: i32, %arg1: i32) -> (i32, i32, i32) {
    %c0_i32 = arith.constant 0 : i32
    %c0_i32_0 = arith.constant 0 : i32
    %c0_i32_1 = arith.constant 0 : i32
    return %arg0, %c0_i32, %c0_i32_0 : i32, i32, i32
  }
  func.func @transform_3(%arg0: i32, %arg1: i32) -> (i32, i32) {
    %c0_i32 = arith.constant 0 : i32
    %c0_i32_0 = arith.constant 0 : i32
    %c0_i32_1 = arith.constant 0 : i32
    return %c0_i32, %c0_i32_0 : i32, i32
  }
  func.func @transform_4(%arg0: i32, %arg1: i32) -> (i32, i32) {
    %c0_i32 = arith.constant 0 : i32
    %c0_i32_0 = arith.constant 0 : i32
    %c0_i32_1 = arith.constant 0 : i32
    return %c0_i32, %c0_i32_0 : i32, i32
  }
  func.func @transform_5(%arg0: i32, %arg1: i32) -> (i32, i32) {
    %c0_i32 = arith.constant 0 : i32
    %c0_i32_0 = arith.constant 0 : i32
    %c0_i32_1 = arith.constant 0 : i32
    return %c0_i32, %c0_i32_0 : i32, i32
  }
  func.func @transform_6(%arg0: i32, %arg1: i32) -> (i32, i32) {
    %c0_i32 = arith.constant 0 : i32
    %c0_i32_0 = arith.constant 0 : i32
    %c0_i32_1 = arith.constant 0 : i32
    return %c0_i32, %c0_i32_0 : i32, i32
  }
  func.func @transform_7(%arg0: i32, %arg1: i32) -> (i32, i32) {
    %c0_i32 = arith.constant 0 : i32
    %c0_i32_0 = arith.constant 0 : i32
    %c0_i32_1 = arith.constant 0 : i32
    return %c0_i32, %c0_i32_0 : i32, i32
  }
  func.func @transform_8(%arg0: i32, %arg1: i32) -> (i32, i32, i32) {
    %c0_i32 = arith.constant 0 : i32
    %c0_i32_0 = arith.constant 0 : i32
    return %arg0, %arg1, %c0_i32 : i32, i32, i32
  }
}

</mosaic_0001>

<bundles_post_ra>
// kernel: tpu_custom_call.1
= control target key start
LH: loop header
LB: loop body
LE: loop exit
PB: predicated region body
PF: predicated region fallthrough
CT: control target
= control target key end

     0   :  { %13 = vsyncpa [#allocation4], 0  ;;  %s3229_s0 = inlined_call_operand.vmem [shape: f32[2,8,32], index: 0, kind: input, shape index: {}]   ;;  %s3230_s1 = inlined_call_operand.vmem [shape: f32[2,128,32], index: 1, kind: input, shape index: {}]   ;;  %s3231_s2 = inlined_call_operand.vmem [shape: f32[2,128,32], index: 2, kind: input, shape index: {}]   ;;  %s3232_s3 = inlined_call_operand.vmem [shape: f32[1,128], index: 3, kind: input, shape index: {}]   ;;  %s3233_s4 = inlined_call_operand.vmem [shape: f32[32,32], index: 4, kind: input, shape index: {}]   ;;  %s3234_s5 = inlined_call_operand.vmem [shape: f32[1,32], index: 5, kind: input, shape index: {}]   ;;  %s3235_s6 = inlined_call_operand.vmem [shape: f32[32,32], index: 6, kind: input, shape index: {}]   ;;  %s3236_s7 = inlined_call_operand.vmem [shape: f32[1,32], index: 7, kind: input, shape index: {}]   ;;  %s3237_s8 = inlined_call_operand.hbm [shape: f32[2,8,32], index: 8, kind: output, shape index: {}]  }
   0x1   :  { %15 = vsyncpa [#allocation4 + $0x1], 0  ;;  %s2467_s27 = smov 0   ;;  %s2469_s28 = smov 0  }
   0x2   :  { %s2471_s29 = smov 0   ;;  %s2473_s30 = smov 0  }
   0x3   :  { %s2475_s9 = smov 0   ;;  %s2477_s10 = smov 0  }
   0x4 LB: > { %s1718_s11 = sadd.s32 4294967295, %s2411_s10   ;;  %s1719_s12 = sadd.s32 4294967294, %s2411_s10   ;;  %s2411_s10 = sphi %s2477_s10, %s21_s10   ;;  %s2407_s9 = sphi %s2475_s9, %s3244_s9   ;;  %s2403_s30 = sphi %s2473_s30, %s3243_s30   ;;  %s2399_s29 = sphi %s2471_s29, %s3242_s29   ;;  %s2395_s28 = sphi %s2469_s28, %s3241_s28   ;;  %s2391_s27 = sphi %s2467_s27, %s3240_s27  }
   0x5   : > { %s33_s13 = sadd.s32 1, %s2407_s9  ;;  %s227_s14 = sadd.s32 1, %s2399_s29 }
   0x6   : > { %p35_p0 = scmp.ge.s32.totalorder %s33_s13, 2  ;;  %p237_p1 = scmp.ne.s32.totalorder %s2399_s29, %s2395_s28 }
   0x7   : > { %p238_p2 = scmp.eq.s32.totalorder %s1718_s11, 1  ;;  %p243_p3 = scmp.ne.s32.totalorder %s2395_s28, %s2391_s27 }
   0x8   : > { %s3246_s13 = smov (%p35_p0, %s33_s13), 0  ;;  %p244_p5 = scmp.eq.s32.totalorder %s1719_s12, 1 }
   0x9   : > { %p2507_p4 = por %p238_p2, %p237_p1  ;;  %s222_s16 = ssub.s32 %s2407_s9, %s3246_s13 }
   0xa   : > { %p1722_p6 = scmp.ge.s32.totalorder %s2411_s10, 1  ;;  %p225_p7 = scmp.eq.s32.totalorder %s222_s16, 0 }
   0xb   : > { %p2514_p8 = por %p244_p5, %p243_p3  ;;  %p303_p9 = scmp.lt.s32.totalorder %s2411_s10, 3 }
   0xc   : > { %s2520_s18 = scalar_select %p225_p7, %s2399_s29, %s227_s14  }
   0xd   : > { %p304_p10 = pnand %p1722_p6, %p303_p9 }
   0xe   : > { %p349_p11 = scmp.lt.s32.totalorder (!%p304_p10), %s2403_s30, 1  ;;  %s2415_s12 = smov (!%p304_p10), 120  }
   0xf   : > { %307 = sbr.rel (%p304_p10) target bundleno = 2346 (0x92a), region = 52  ;;  %s2417_s21 = smov (!%p304_p10), 104  }
  0x10   : > { %s2418_s22 = smov (!%p304_p10), 8   ;;  %s1803_s25 = sshll.u32 (!%p304_p10), %s2403_s30, 7 }
  0x11   : > { %s3188_s16 = scalar_lea.hbm (!%p304_p10), %s3237_s8, %s1803_s25 }
  0x14   : > { %v370_v0 = vld [vmem:[%s3233_s4 + $0x18] sm:$0xff]  ;;  %v2413_v1 = vmov 0.0   ;;  %v369_v2 = vld [vmem:[%s3233_s4 + $0x10] sm:$0xff]  ;;  %vm2414_vm0 = vmmov 0   ;;  %s350_s23 = scalar_select %p349_p11, %s2403_s30, 1  ;;  %v368_v3 = vld [vmem:[%s3233_s4 + $0x8] sm:$0xff] }
  0x15   : > { %1954 = vmatprep.subr.mxu0 %v2413_v1  ;;  %1962 = vmatprep.mubr.msk.f32.mxu0 %vm2414_vm0, %v2413_v1  ;;  %v367_v4 = vld [vmem:[%s3233_s4] sm:$0xff]  ;;  %vm378_vm1 = vcmask 261120   ;;  %vm491_vm2 = vcmask 64512   ;;  %vm978_vm3 = vcmask 130112   ;;  %vm1249_vm4 = vcmask 195712   ;;  %s2421_s30 = smov [#allocation3]  }
  0x16   : > { %1955 = vmatpush3.msra.mxu0 %v370_v0  ;;  %1965 = vmatprep.subr.mxu1 %v2413_v1  ;;  %s1724_s26 = sshll.u32 %s350_s23, 3  ;;  %s1806_s11 = sshll.u32 %s350_s23, 7  ;;  %v1729_v52 = vld [vmem:[%s3234_s5] ss:$0 sm:$0xff]  ;;  %vm1520_vm5 = vcmask 261312  }
  0x17   : > { %1956 = vmatprep.subr.mxu0 %v2413_v1  ;;  %1997 = vmatprep.mubr.msk.f32.mxu1 %vm2414_vm0, %v2413_v1  ;;  %s355_s20 = scalar_lea.vmem %s3229_s0, %s1724_s26  ;;  %s2550_s24 = scalar_lea.vmem %s3230_s1, %s1806_s11  ;;  %v2831_v60 = vld [vmem:[%s3232_s3] ss:$0 sm:$0xff] }
  0x18   : > { %1957 = vmatpush3.msra.mxu0 %v369_v2  ;;  %v366_v5 = vld [vmem:[%s355_s20] sm:$0xff]  ;;  %v2553_v6 = vld [vmem:[%s2550_s24 + $0x70] sm:$0xff]  ;;  %s2559_s26 = scalar_lea.vmem %s3231_s2, %s1806_s11  ;;  %v2564_v7 = vld [vmem:[%s2550_s24 + $0x68] sm:$0xff]  ;;  %s2416_s11 = smov 112  }
  0x19   : > { %1958 = vmatprep.subr.mxu0 %v2413_v1  ;;  %723 = vrot.lane.b32.xlu1 %v2553_v6, %s2415_s12  ;;  %v2569_v8 = vld [vmem:[%s2559_s26 + $0x78] sm:$0xff]  ;;  %v2577_v9 = vld [vmem:[%s2550_s24 + $0x60] sm:$0xff]  ;;  %v2580_v10 = vld [vmem:[%s2559_s26 + $0x70] sm:$0xff]  ;;  %s2420_s20 = smov 24  }
  0x1a   : > { %1959 = vmatpush3.msra.mxu0 %v368_v3  ;;  %v2583_v11 = vld [vmem:[%s2550_s24 + $0x78] sm:$0xff]  ;;  %v2590_v12 = vld [vmem:[%s2559_s26 + $0x68] sm:$0xff]  ;;  %v2601_v14 = vld [vmem:[%s2559_s26 + $0x60] sm:$0xff] }
  0x1b   : > { %1960 = vmatprep.subr.mxu0 %v2413_v1  ;;  %1966 = vmatpush3.xpose.msk.msra.mxu1 %vm491_vm2, %v2583_v11  ;;  %v2598_v13 = vld [vmem:[%s2550_s24 + $0x58] sm:$0xff]  ;;  %v2616_v16 = vld [vmem:[%s2550_s24 + $0x50] sm:$0xff]  ;;  %v2626_v18 = vld [vmem:[%s2559_s26 + $0x48] sm:$0xff] }
  0x1c   : > { %1961 = vmatpush3.msra.mxu0 %v367_v4  ;;  %1967 = vmatprep.subr.mxu1 %v2413_v1  ;;  %v2608_v15 = vld [vmem:[%s2559_s26 + $0x58] sm:$0xff]  ;;  %v2619_v17 = vld [vmem:[%s2559_s26 + $0x50] sm:$0xff]  ;;  %v2634_v19 = vld [vmem:[%s2550_s24 + $0x48] sm:$0xff] }
  0x1d   : > { %1963 = vmatmul.mubr.msk.f32.vlgmr.msra.gmra.mxu0 %vm378_vm1, %v366_v5  ;;  %2000 = vmatprep.subr.mxu0 %v2413_v1  ;;  %v2637_v20 = vld [vmem:[%s2559_s26 + $0x40] sm:$0xff]  ;;  %v2644_v21 = vld [vmem:[%s2559_s26 + $0x38] sm:$0xff]  ;;  %v2661_v23 = vld [vmem:[%s2550_s24 + $0x30] sm:$0xff] }
  0x1e   : > { %2032 = vmatprep.mubr.msk.f32.mxu0 %vm2414_vm0, %v2413_v1  ;;  %721 = vrot.lane.b32.xlu1 %v2564_v7, %s2415_s12  ;;  %v2652_v22 = vld [vmem:[%s2550_s24 + $0x40] sm:$0xff]  ;;  %v2677_v25 = vld [vmem:[%s2550_s24 + $0x10] sm:$0xff]  ;;  %v2683_v26 = vld [vmem:[%s2550_s24 + $0x38] sm:$0xff] }
  0x1f   : > { %2001 = vmatpush3.msra.mxu0 %v2569_v8  ;;  %1968 = vmatpush3.xpose.msk.msra.mxu1 %vm491_vm2, %v2553_v6  ;;  %v2669_v24 = vld [vmem:[%s2550_s24 + $0x20] sm:$0xff]  ;;  %v2699_v28 = vld [vmem:[%s2550_s24 + $0x28] sm:$0xff]  ;;  %v2712_v29 = vld [vmem:[%s2550_s24 + $0x18] sm:$0xff] }
  0x20   : > { %2002 = vmatprep.subr.mxu0 %v2413_v1  ;;  %1969 = vmatprep.subr.mxu1 %v2413_v1  ;;  %v2688_v27 = vld [vmem:[%s2550_s24] sm:$0xff]  ;;  %v2725_v30 = vld [vmem:[%s2550_s24 + $0x8] sm:$0xff]  ;;  %v2754_v33 = vld [vmem:[%s2559_s26 + $0x18] sm:$0xff]  ;;  %s2419_s24 = smov 16  }
  0x21   : > { %2003 = vmatpush3.msra.mxu0 %v2580_v10  ;;  %v2744_v31 = vld [vmem:[%s2559_s26 + $0x28] sm:$0xff]  ;;  %v2749_v32 = vld [vmem:[%s2559_s26 + $0x20] sm:$0xff]  ;;  %v2759_v34 = vld [vmem:[%s2559_s26 + $0x10] sm:$0xff] }
  0x22   : > { %2004 = vmatprep.subr.mxu0 %v2413_v1  ;;  %719 = vrot.lane.b32.xlu1 %v2577_v9, %s2415_s12  ;;  %v2764_v35 = vld [vmem:[%s2559_s26 + $0x8] sm:$0xff]  ;;  %v2835_v0 = vld [vmem:[%s2559_s26 + $0x30] sm:$0xff]  ;;  %v2852_v2 = vld [vmem:[%s2559_s26] sm:$0xff] }
  0x23   : > { %2005 = vmatpush3.msra.mxu0 %v2590_v12  ;;  %1970 = vmatpush3.xpose.msk.msra.mxu1 %vm491_vm2, %v2564_v7 }
  0x24   : > { %2006 = vmatprep.subr.mxu0 %v2413_v1  ;;  %1971 = vmatprep.subr.mxu1 %v2413_v1 }
  0x25   : > { %2007 = vmatpush3.msra.mxu0 %v2601_v14 }
  0x26   : > { %2008 = vmatprep.subr.mxu0 %v2413_v1  ;;  %717 = vrot.lane.b32.xlu1 %v2598_v13, %s2415_s12 }
  0x27   : > { %2009 = vmatpush3.msra.mxu0 %v2608_v15  ;;  %1972 = vmatpush3.xpose.msk.msra.mxu1 %vm491_vm2, %v2577_v9 }
  0x28   : > { %2010 = vmatprep.subr.mxu0 %v2413_v1  ;;  %1973 = vmatprep.subr.mxu1 %v2413_v1 }
  0x29   : > { %2011 = vmatpush3.msra.mxu0 %v2619_v17 }
  0x2a   : > { %2012 = vmatprep.subr.mxu0 %v2413_v1  ;;  %715 = vrot.lane.b32.xlu1 %v2616_v16, %s2415_s12 }
  0x2b   : > { %2013 = vmatpush3.msra.mxu0 %v2626_v18  ;;  %1974 = vmatpush3.xpose.msk.msra.mxu1 %vm491_vm2, %v2598_v13 }
  0x2c   : > { %2014 = vmatprep.subr.mxu0 %v2413_v1  ;;  %1975 = vmatprep.subr.mxu1 %v2413_v1 }
  0x2d   : > { %2015 = vmatpush3.msra.mxu0 %v2637_v20 }
  0x2e   : > { %2016 = vmatprep.subr.mxu0 %v2413_v1  ;;  %713 = vrot.lane.b32.xlu1 %v2634_v19, %s2415_s12 }
  0x2f   : > { %2017 = vmatpush3.msra.mxu0 %v2644_v21  ;;  %1976 = vmatpush3.xpose.msk.msra.mxu1 %vm491_vm2, %v2616_v16 }
  0x30   : > { %2018 = vmatprep.subr.mxu0 %v2413_v1  ;;  %1977 = vmatprep.subr.mxu1 %v2413_v1 }
  0x31   : > { %2019 = vmatpush3.msra.mxu0 %v2835_v0 }
  0x32   : > { %711 = vrot.lane.b32.xlu1 %v2652_v22, %s2415_s12  ;;  %2020 = vmatprep.subr.mxu0 %v2413_v1 }
  0x33   : > { %1978 = vmatpush3.xpose.msk.msra.mxu1 %vm491_vm2, %v2634_v19  ;;  %2021 = vmatpush3.msra.mxu0 %v2744_v31 }
  0x34   : > { %1979 = vmatprep.subr.mxu1 %v2413_v1  ;;  %2022 = vmatprep.subr.mxu0 %v2413_v1 }
  0x35   : > { %2023 = vmatpush3.msra.mxu0 %v2749_v32 }
  0x36   : > { %707 = vrot.lane.b32.xlu1 %v2661_v23, %s2415_s12  ;;  %2024 = vmatprep.subr.mxu0 %v2413_v1 }
  0x37   : > { %1980 = vmatpush3.xpose.msk.msra.mxu1 %vm491_vm2, %v2652_v22  ;;  %2025 = vmatpush3.msra.mxu0 %v2754_v33 }
  0x38   : > { %1981 = vmatprep.subr.mxu1 %v2413_v1  ;;  %2026 = vmatprep.subr.mxu0 %v2413_v1 }
  0x39   : > { %2027 = vmatpush3.msra.mxu0 %v2759_v34 }
  0x3a   : > { %703 = vrot.lane.b32.xlu1 %v2669_v24, %s2415_s12  ;;  %2028 = vmatprep.subr.mxu0 %v2413_v1 }
  0x3b   : > { %1982 = vmatpush3.xpose.msk.msra.mxu1 %vm491_vm2, %v2683_v26  ;;  %2029 = vmatpush3.msra.mxu0 %v2764_v35 }
  0x3c   : > { %1983 = vmatprep.subr.mxu1 %v2413_v1  ;;  %2030 = vmatprep.subr.mxu0 %v2413_v1 }
  0x3d   : > { %2031 = vmatpush3.msra.mxu0 %v2852_v2 }
  0x3e   : > { %699 = vrot.lane.b32.xlu1 %v2677_v25, %s2415_s12  ;;  %2035 = vmatprep.subr.mxu0 %v2413_v1 }
  0x3f   : > { %1984 = vmatpush3.xpose.msk.msra.mxu1 %vm491_vm2, %v2661_v23 }
  0x40   : > { %1985 = vmatprep.subr.mxu1 %v2413_v1 }
  0x42   : > { %695 = vrot.lane.b32.xlu1 %v2688_v27, %s2415_s12 }
  0x43   : > { %1986 = vmatpush3.xpose.msk.msra.mxu1 %vm491_vm2, %v2699_v28 }
  0x44   : > { %1987 = vmatprep.subr.mxu1 %v2413_v1 }
  0x46   : > { %884 = vrot.lane.b32.xlu1 %v2569_v8, %s2415_s12 }
  0x47   : > { %1988 = vmatpush3.xpose.msk.msra.mxu1 %vm491_vm2, %v2669_v24 }
  0x48   : > { %1989 = vmatprep.subr.mxu1 %v2413_v1 }
  0x4a   : > { %882 = vrot.lane.b32.xlu1 %v2580_v10, %s2415_s12 }
  0x4b   : > { %1990 = vmatpush3.xpose.msk.msra.mxu1 %vm491_vm2, %v2712_v29 }
  0x4c   : > { %1991 = vmatprep.subr.mxu1 %v2413_v1 }
  0x4e   : > { %880 = vrot.lane.b32.xlu1 %v2590_v12, %s2415_s12 }
  0x4f   : > { %1992 = vmatpush3.xpose.msk.msra.mxu1 %vm491_vm2, %v2677_v25 }
  0x50   : > { %1993 = vmatprep.subr.mxu1 %v2413_v1 }
  0x52   : > { %878 = vrot.lane.b32.xlu1 %v2601_v14, %s2415_s12 }
  0x53   : > { %1994 = vmatpush3.xpose.msk.msra.mxu1 %vm491_vm2, %v2725_v30 }
  0x54   : > { %1995 = vmatprep.subr.mxu1 %v2413_v1 }
  0x56   : > { %876 = vrot.lane.b32.xlu1 %v2608_v15, %s2415_s12 }
  0x57   : > { %1996 = vmatpush3.xpose.msk.msra.mxu1 %vm491_vm2, %v2688_v27 }
  0x58   : > { %2070 = vmatprep.subr.mxu1 %v2413_v1 }
  0x5a   : > { %874 = vrot.lane.b32.xlu1 %v2619_v17, %s2415_s12 }
  0x5e   : > { %872 = vrot.lane.b32.xlu1 %v2626_v18, %s2415_s12 }
  0x62   : > { %870 = vrot.lane.b32.xlu1 %v2637_v20, %s2415_s12 }
  0x66   : > { %868 = vrot.lane.b32.xlu1 %v2644_v21, %s2415_s12 }
  0x6a   : > { %864 = vrot.lane.b32.xlu1 %v2744_v31, %s2415_s12 }
  0x6e   : > { %862 = vrot.lane.b32.xlu1 %v2749_v32, %s2415_s12 }
  0x72   : > { %860 = vrot.lane.b32.xlu1 %v2754_v33, %s2415_s12 }
  0x76   : > { %858 = vrot.lane.b32.xlu1 %v2759_v34, %s2415_s12 }
  0x7a   : > { %856 = vrot.lane.b32.xlu1 %v2764_v35, %s2415_s12 }
  0x7e   : > { %1012 = vrot.lane.b32.xlu1 %v2583_v11, %s2416_s11 }
  0x82   : > { %1008 = vrot.lane.b32.xlu1 %v2564_v7, %s2416_s11 }
  0x86   : > { %1004 = vrot.lane.b32.xlu1 %v2598_v13, %s2416_s11 }
  0x8a   : > { %1000 = vrot.lane.b32.xlu1 %v2634_v19, %s2416_s11 }
  0x8b   : > { %v2776_v36 = vpop.permute.xlu1 %723 }
  0x8e   : > { %996 = vrot.lane.b32.xlu1 %v2683_v26, %s2416_s11 }
  0x90   : > { %v2780_v37 = vpop.permute.xlu1 %721 }
  0x92   : > { %992 = vrot.lane.b32.xlu1 %v2699_v28, %s2416_s11 }
  0x94   : > { %v2784_v38 = vpop.permute.xlu1 %719 }
  0x96   : > { %988 = vrot.lane.b32.xlu1 %v2712_v29, %s2416_s11 }
  0x98   : > { %v2788_v39 = vpop.permute.xlu1 %717 }
  0x9a   : > { %984 = vrot.lane.b32.xlu1 %v2725_v30, %s2416_s11 }
  0x9c   : > { %v2792_v40 = vpop.permute.xlu1 %715 }
  0xa0   : > { %v2794_v41 = vpop.permute.xlu1 %713 }
  0xa4   : > { %v2796_v42 = vpop.permute.xlu1 %711 }
  0xa8   : > { %v2798_v43 = vpop.permute.xlu1 %707 }
  0xac   : > { %v2800_v44 = vpop.permute.xlu1 %703 }
  0xb0   : > { %v2802_v45 = vpop.permute.xlu1 %699 }
  0xb4   : > { %v2804_v46 = vpop.permute.xlu1 %695 }
  0xb8   : > { %v885_v47 = vpop.permute.xlu1 %884 }
  0xbc   : > { %v883_v48 = vpop.permute.xlu1 %882 }
  0xc0   : > { %v881_v49 = vpop.permute.xlu1 %880 }
  0xc4   : > { %v879_v50 = vpop.permute.xlu1 %878 }
  0xc8   : > { %v877_v51 = vpop.permute.xlu1 %876 }
  0xcc   : > { %v875_v55 = vpop.permute.xlu1 %874 }
  0xd0   : > { %v873_v57 = vpop.permute.xlu1 %872 }
  0xd4   : > { %v871_v58 = vpop.permute.xlu1 %870 }
  0xd8   : > { %v869_v59 = vpop.permute.xlu1 %868 }
  0xdd   : > { %v448_v53 = vpop.f32.mrf.mxu0 }
  0xde   : > { %v2809_v54 = vadd.f32 %v1729_v52, %v448_v53 }
  0xdf   : > { %v1964_v56 = vpop.f32.mrf.mxu0 }
  0xe0   : > { %980 = vrot.lane.b32.xlu1 %v2809_v54, %s2416_s11  ;;  %1998 = vmatmul.mubr.msk.f32.vlgmr.msra.gmra.mxu1 %vm491_vm2, %v2809_v54 }
  0xe1   : > { %2071 = vmatpush3.msra.mxu1 %v885_v47  ;;  %2102 = vmatprep.mubr.msk.f32.mxu1 %vm2414_vm0, %v2413_v1 }
  0xe2   : > { %2072 = vmatprep.subr.mxu1 %v2413_v1 }
  0xe3   : > { %2073 = vmatpush3.msra.mxu1 %v883_v48 }
  0xe4   : > { %2074 = vmatprep.subr.mxu1 %v2413_v1  ;;  %1135 = vrot.lane.b32.xlu1 %v2744_v31, %s2416_s11 }
  0xe5   : > { %2075 = vmatpush3.msra.mxu1 %v881_v49 }
  0xe6   : > { %2076 = vmatprep.subr.mxu1 %v2413_v1 }
  0xe7   : > { %2077 = vmatpush3.msra.mxu1 %v879_v50 }
  0xe8   : > { %2078 = vmatprep.subr.mxu1 %v2413_v1  ;;  %1125 = vrot.lane.b32.xlu1 %v2852_v2, %s2416_s11 }
  0xe9   : > { %2079 = vmatpush3.msra.mxu1 %v877_v51 }
  0xea   : > { %2080 = vmatprep.subr.mxu1 %v2413_v1 }
  0xeb   : > { %2081 = vmatpush3.msra.mxu1 %v875_v55 }
  0xec   : > { %2082 = vmatprep.subr.mxu1 %v2413_v1 }
  0xed   : > { %2083 = vmatpush3.msra.mxu1 %v873_v57 }
  0xee   : > { %2084 = vmatprep.subr.mxu1 %v2413_v1 }
  0xef   : > { %2085 = vmatpush3.msra.mxu1 %v871_v58 }
  0xf0   : > { %2086 = vmatprep.subr.mxu1 %v2413_v1 }
  0xf1   : > { %2087 = vmatpush3.msra.mxu1 %v869_v59 }
  0xf2   : > { %2088 = vmatprep.subr.mxu1 %v2413_v1 }
 0x1a0   : > { %v609_v61 = vpop.f32.mrf.mxu1 }
 0x1a1   : > { %v610_v62 = vadd.f32 %v2831_v60, %v609_v61 }
 0x1a2   : > { %v1999_v63 = vpop.f32.mrf.mxu1 }
 0x1a3   : > { %613 = vmax.xlane.f32.xlu0 %v610_v62 }
 0x1b9   : > { %725 = vrot.lane.b32.xlu0 %v2583_v11, %s2415_s12 }
 0x1bd   : > { %709 = vrot.lane.b32.xlu0 %v2683_v26, %s2415_s12 }
 0x1c1   : > { %705 = vrot.lane.b32.xlu0 %v2699_v28, %s2415_s12 }
 0x1c5   : > { %701 = vrot.lane.b32.xlu0 %v2712_v29, %s2415_s12 }
 0x1c9   : > { %697 = vrot.lane.b32.xlu0 %v2725_v30, %s2415_s12 }
 0x1cd   : > { %693 = vrot.lane.b32.xlu0 %v2809_v54, %s2415_s12 }
 0x1d1   : > { %866 = vrot.lane.b32.xlu0 %v2835_v0, %s2415_s12 }
 0x22c   : > { %v614_v3 = vpop.xlane.xlu0 %613 }
 0x22d   : > { %v615_v4 = vsub.f32 %v610_v62, %v614_v3 }
 0x22f   : > { %v616_v5 = vmul.f32 1.442695, %v615_v4 }
 0x230   : > { %v726_v48 = vpop.permute.xlu0 %725 }
 0x231   : > { %2319 = vpow2.f32 %v616_v5 }
 0x23e   : > { %v2870_v47 = vpop.eup %2319 }
 0x23f   : > { %2033 = vmatmul.mubr.f32.vlgmr.msra.gmra.mxu0 %v2870_v47 }
 0x240   : > { %2036 = vmatpush3.xpose.msk.msra.mxu0 %vm491_vm2, %v726_v48  ;;  %2067 = vmatprep.mubr.msk.f32.mxu0 %vm2414_vm0, %v2413_v1 }
 0x241   : > { %2037 = vmatprep.subr.mxu0 %v2413_v1 }
 0x244   : > { %2038 = vmatpush3.xpose.msk.msra.mxu0 %vm491_vm2, %v2776_v36  ;;  %v710_v36 = vpop.permute.xlu0 %709 }
 0x245   : > { %2039 = vmatprep.subr.mxu0 %v2413_v1 }
 0x248   : > { %2040 = vmatpush3.xpose.msk.msra.mxu0 %vm491_vm2, %v2780_v37  ;;  %v706_v37 = vpop.permute.xlu0 %705 }
 0x249   : > { %2041 = vmatprep.subr.mxu0 %v2413_v1 }
 0x24c   : > { %2042 = vmatpush3.xpose.msk.msra.mxu0 %vm491_vm2, %v2784_v38  ;;  %v702_v38 = vpop.permute.xlu0 %701 }
 0x24d   : > { %2043 = vmatprep.subr.mxu0 %v2413_v1 }
 0x250   : > { %2044 = vmatpush3.xpose.msk.msra.mxu0 %vm491_vm2, %v2788_v39  ;;  %v698_v39 = vpop.permute.xlu0 %697 }
 0x251   : > { %2045 = vmatprep.subr.mxu0 %v2413_v1 }
 0x254   : > { %2046 = vmatpush3.xpose.msk.msra.mxu0 %vm491_vm2, %v2792_v40  ;;  %v694_v40 = vpop.permute.xlu0 %693 }
 0x255   : > { %2047 = vmatprep.subr.mxu0 %v2413_v1 }
 0x258   : > { %2048 = vmatpush3.xpose.msk.msra.mxu0 %vm491_vm2, %v2794_v41  ;;  %v867_v49 = vpop.permute.xlu0 %866 }
 0x259   : > { %2049 = vmatprep.subr.mxu0 %v2413_v1  ;;  %2089 = vmatpush3.msra.mxu1 %v867_v49 }
 0x25a   : > { %2090 = vmatprep.subr.mxu1 %v2413_v1 }
 0x25c   : > { %2050 = vmatpush3.xpose.msk.msra.mxu0 %vm491_vm2, %v2796_v42 }
 0x25d   : > { %2051 = vmatprep.subr.mxu0 %v2413_v1 }
 0x260   : > { %2052 = vmatpush3.xpose.msk.msra.mxu0 %vm491_vm2, %v710_v36 }
 0x261   : > { %2053 = vmatprep.subr.mxu0 %v2413_v1 }
 0x264   : > { %2054 = vmatpush3.xpose.msk.msra.mxu0 %vm491_vm2, %v2798_v43  ;;  %v865_v43 = vpop.permute.xlu1 %864 }
 0x265   : > { %2055 = vmatprep.subr.mxu0 %v2413_v1  ;;  %2091 = vmatpush3.msra.mxu1 %v865_v43 }
 0x266   : > { %2092 = vmatprep.subr.mxu1 %v2413_v1 }
 0x268   : > { %2056 = vmatpush3.xpose.msk.msra.mxu0 %vm491_vm2, %v706_v37 }
 0x269   : > { %2057 = vmatprep.subr.mxu0 %v2413_v1 }
 0x26c   : > { %2058 = vmatpush3.xpose.msk.msra.mxu0 %vm491_vm2, %v2800_v44  ;;  %v863_v44 = vpop.permute.xlu1 %862 }
 0x26d   : > { %2059 = vmatprep.subr.mxu0 %v2413_v1  ;;  %2093 = vmatpush3.msra.mxu1 %v863_v44 }
 0x26e   : > { %2094 = vmatprep.subr.mxu1 %v2413_v1 }
 0x270   : > { %2060 = vmatpush3.xpose.msk.msra.mxu0 %vm491_vm2, %v702_v38 }
 0x271   : > { %2061 = vmatprep.subr.mxu0 %v2413_v1 }
 0x274   : > { %2062 = vmatpush3.xpose.msk.msra.mxu0 %vm491_vm2, %v2802_v45  ;;  %v861_v45 = vpop.permute.xlu1 %860 }
 0x275   : > { %2063 = vmatprep.subr.mxu0 %v2413_v1  ;;  %2095 = vmatpush3.msra.mxu1 %v861_v45 }
 0x276   : > { %2096 = vmatprep.subr.mxu1 %v2413_v1 }
 0x278   : > { %2064 = vmatpush3.xpose.msk.msra.mxu0 %vm491_vm2, %v698_v39 }
 0x279   : > { %2065 = vmatprep.subr.mxu0 %v2413_v1 }
 0x27c   : > { %2066 = vmatpush3.xpose.msk.msra.mxu0 %vm491_vm2, %v2804_v46  ;;  %v859_v46 = vpop.permute.xlu1 %858 }
 0x27d   : > { %2140 = vmatprep.subr.mxu0 %v2413_v1  ;;  %2097 = vmatpush3.msra.mxu1 %v859_v46 }
 0x27e   : > { %2098 = vmatprep.subr.mxu1 %v2413_v1 }
 0x27f   : > { %2068 = vmatmul.mubr.msk.f32.vlgmr.msra.gmra.mxu0 %vm491_vm2, %v694_v40 }
 0x280   : > { %2172 = vmatprep.mubr.msk.f32.mxu0 %vm2414_vm0, %v2413_v1  ;;  %v857_v50 = vpop.permute.xlu1 %856 }
 0x281   : > { %2099 = vmatpush3.msra.mxu1 %v857_v50 }
 0x282   : > { %2100 = vmatprep.subr.mxu1 %v2413_v1 }
 0x2ff   : > { %v2921_v41 = vpop.f32.mrf.mxu0 }
 0x301   : > { %v2034_v42 = vpop.f32.mrf.mxu0 }
 0x33f   : > { %v827_v51 = vpop.f32.mrf.mxu0 }
 0x340   : > { %v828_v52 = vadd.f32 %v2831_v60, %v827_v51 }
 0x341   : > { %v2069_v53 = vpop.f32.mrf.mxu0 }
 0x342   : > { %831 = vmax.xlane.f32.xlu0 %v828_v52 }
 0x358   : > { %854 = vrot.lane.b32.xlu0 %v2852_v2, %s2415_s12 }
 0x35c   : > { %1010 = vrot.lane.b32.xlu0 %v2553_v6, %s2416_s11 }
 0x360   : > { %1006 = vrot.lane.b32.xlu0 %v2577_v9, %s2416_s11 }
 0x364   : > { %1002 = vrot.lane.b32.xlu0 %v2616_v16, %s2416_s11 }
 0x368   : > { %998 = vrot.lane.b32.xlu0 %v2652_v22, %s2416_s11 }
 0x36c   : > { %994 = vrot.lane.b32.xlu0 %v2661_v23, %s2416_s11 }
 0x370   : > { %990 = vrot.lane.b32.xlu0 %v2669_v24, %s2416_s11 }
 0x374   : > { %986 = vrot.lane.b32.xlu0 %v2677_v25, %s2416_s11 }
 0x378   : > { %982 = vrot.lane.b32.xlu0 %v2688_v27, %s2416_s11 }
 0x37c   : > { %1155 = vrot.lane.b32.xlu0 %v2569_v8, %s2416_s11 }
 0x380   : > { %1153 = vrot.lane.b32.xlu0 %v2580_v10, %s2416_s11 }
 0x384   : > { %1151 = vrot.lane.b32.xlu0 %v2590_v12, %s2416_s11 }
 0x388   : > { %1149 = vrot.lane.b32.xlu0 %v2601_v14, %s2416_s11 }
 0x38c   : > { %1147 = vrot.lane.b32.xlu0 %v2608_v15, %s2416_s11 }
 0x390   : > { %1145 = vrot.lane.b32.xlu0 %v2619_v17, %s2416_s11 }
 0x394   : > { %1143 = vrot.lane.b32.xlu0 %v2626_v18, %s2416_s11 }
 0x398   : > { %1141 = vrot.lane.b32.xlu0 %v2637_v20, %s2416_s11 }
 0x39c   : > { %1139 = vrot.lane.b32.xlu0 %v2644_v21, %s2416_s11 }
 0x3a0   : > { %1137 = vrot.lane.b32.xlu0 %v2835_v0, %s2416_s11 }
 0x3a4   : > { %1133 = vrot.lane.b32.xlu0 %v2749_v32, %s2416_s11 }
 0x3a8   : > { %1131 = vrot.lane.b32.xlu0 %v2754_v33, %s2416_s11 }
 0x3ac   : > { %1129 = vrot.lane.b32.xlu0 %v2759_v34, %s2416_s11 }
 0x3b0   : > { %1127 = vrot.lane.b32.xlu0 %v2764_v35, %s2416_s11 }
 0x3b4   : > { %1283 = vrot.lane.b32.xlu0 %v2583_v11, %s2417_s21 }
 0x3b8   : > { %1279 = vrot.lane.b32.xlu0 %v2564_v7, %s2417_s21 }
 0x3bc   : > { %1275 = vrot.lane.b32.xlu0 %v2598_v13, %s2417_s21 }
 0x3c0   : > { %1271 = vrot.lane.b32.xlu0 %v2634_v19, %s2417_s21 }
 0x3c4   : > { %1267 = vrot.lane.b32.xlu0 %v2683_v26, %s2417_s21 }
 0x3c8   : > { %1263 = vrot.lane.b32.xlu0 %v2699_v28, %s2417_s21  ;;  %v1013_v28 = vpop.permute.xlu1 %1012 }
 0x3cb   : > { %v832_v55 = vpop.xlane.xlu0 %831 }
 0x3cc   : > { %v833_v56 = vsub.f32 %v828_v52, %v832_v55  ;;  %1259 = vrot.lane.b32.xlu0 %v2712_v29, %s2417_s21 }
 0x3ce   : > { %v834_v11 = vmul.f32 1.442695, %v833_v56 }
 0x3cf   : > { %v855_v57 = vpop.permute.xlu0 %854 }
 0x3d0   : > { %2321 = vpow2.f32 %v834_v11  ;;  %1255 = vrot.lane.b32.xlu0 %v2725_v30, %s2417_s21  ;;  %2101 = vmatpush3.msra.mxu1 %v855_v57 }
 0x3d1   : > { %2105 = vmatprep.subr.mxu1 %v2413_v1 }
 0x3d3   : > { %v1011_v7 = vpop.permute.xlu0 %1010 }
 0x3d4   : > { %1251 = vrot.lane.b32.xlu0 %v2809_v54, %s2417_s21  ;;  %v1009_v54 = vpop.permute.xlu1 %1008 }
 0x3d7   : > { %v1007_v13 = vpop.permute.xlu0 %1006 }
 0x3d8   : > { %1408 = vrot.lane.b32.xlu0 %v2835_v0, %s2417_s21  ;;  %v1005_v61 = vpop.permute.xlu1 %1004 }
 0x3db   : > { %v1003_v19 = vpop.permute.xlu0 %1002 }
 0x3dc   : > { %v1001_v0 = vpop.permute.xlu1 %1000 }
 0x3dd   : > { %v2997_v26 = vpop.eup %2321 }
 0x3de   : > { %2103 = vmatmul.mubr.f32.vlgmr.msra.gmra.mxu1 %v2997_v26 }
 0x3df   : > { %2106 = vmatpush3.xpose.msk.msra.mxu1 %vm491_vm2, %v1013_v28  ;;  %v999_v29 = vpop.permute.xlu0 %998  ;;  %2137 = vmatprep.mubr.msk.f32.mxu1 %vm2414_vm0, %v2413_v1 }
 0x3e0   : > { %2107 = vmatprep.subr.mxu1 %v2413_v1  ;;  %v997_v5 = vpop.permute.xlu1 %996 }
 0x3e3   : > { %2108 = vmatpush3.xpose.msk.msra.mxu1 %vm491_vm2, %v1011_v7  ;;  %v995_v30 = vpop.permute.xlu0 %994 }
 0x3e4   : > { %2109 = vmatprep.subr.mxu1 %v2413_v1  ;;  %v993_v37 = vpop.permute.xlu1 %992 }
 0x3e7   : > { %2110 = vmatpush3.xpose.msk.msra.mxu1 %vm491_vm2, %v1009_v54  ;;  %v991_v58 = vpop.permute.xlu0 %990 }
 0x3e8   : > { %2111 = vmatprep.subr.mxu1 %v2413_v1  ;;  %v989_v40 = vpop.permute.xlu1 %988 }
 0x3eb   : > { %2112 = vmatpush3.xpose.msk.msra.mxu1 %vm491_vm2, %v1007_v13  ;;  %v987_v59 = vpop.permute.xlu0 %986 }
 0x3ec   : > { %2113 = vmatprep.subr.mxu1 %v2413_v1  ;;  %v985_v44 = vpop.permute.xlu1 %984 }
 0x3ef   : > { %2114 = vmatpush3.xpose.msk.msra.mxu1 %vm491_vm2, %v1005_v61  ;;  %v983_v62 = vpop.permute.xlu0 %982 }
 0x3f0   : > { %2115 = vmatprep.subr.mxu1 %v2413_v1  ;;  %v981_v49 = vpop.permute.xlu1 %980 }
 0x3f3   : > { %2116 = vmatpush3.xpose.msk.msra.mxu1 %vm491_vm2, %v1003_v19  ;;  %v1156_v63 = vpop.permute.xlu0 %1155 }
 0x3f4   : > { %2117 = vmatprep.subr.mxu1 %v2413_v1  ;;  %2141 = vmatpush3.msra.mxu0 %v1156_v63  ;;  %v1136_v53 = vpop.permute.xlu1 %1135 }
 0x3f5   : > { %2142 = vmatprep.subr.mxu0 %v2413_v1 }
 0x3f7   : > { %2118 = vmatpush3.xpose.msk.msra.mxu1 %vm491_vm2, %v1001_v0  ;;  %v1154_v3 = vpop.permute.xlu0 %1153 }
 0x3f8   : > { %2119 = vmatprep.subr.mxu1 %v2413_v1  ;;  %2143 = vmatpush3.msra.mxu0 %v1154_v3  ;;  %v1126_v11 = vpop.permute.xlu1 %1125 }
 0x3f9   : > { %2144 = vmatprep.subr.mxu0 %v2413_v1 }
 0x3fb   : > { %2120 = vmatpush3.xpose.msk.msra.mxu1 %vm491_vm2, %v999_v29  ;;  %v1152_v4 = vpop.permute.xlu0 %1151 }
 0x3fc   : > { %2121 = vmatprep.subr.mxu1 %v2413_v1  ;;  %2145 = vmatpush3.msra.mxu0 %v1152_v4 }
 0x3fd   : > { %2146 = vmatprep.subr.mxu0 %v2413_v1 }
 0x3ff   : > { %2122 = vmatpush3.xpose.msk.msra.mxu1 %vm491_vm2, %v997_v5  ;;  %v1150_v48 = vpop.permute.xlu0 %1149 }
 0x400   : > { %2123 = vmatprep.subr.mxu1 %v2413_v1  ;;  %2147 = vmatpush3.msra.mxu0 %v1150_v48 }
 0x401   : > { %2148 = vmatprep.subr.mxu0 %v2413_v1 }
 0x403   : > { %2124 = vmatpush3.xpose.msk.msra.mxu1 %vm491_vm2, %v995_v30  ;;  %v1148_v36 = vpop.permute.xlu0 %1147 }
 0x404   : > { %2125 = vmatprep.subr.mxu1 %v2413_v1  ;;  %2149 = vmatpush3.msra.mxu0 %v1148_v36 }
 0x405   : > { %2150 = vmatprep.subr.mxu0 %v2413_v1 }
 0x407   : > { %2126 = vmatpush3.xpose.msk.msra.mxu1 %vm491_vm2, %v993_v37  ;;  %v1146_v38 = vpop.permute.xlu0 %1145 }
 0x408   : > { %2127 = vmatprep.subr.mxu1 %v2413_v1  ;;  %2151 = vmatpush3.msra.mxu0 %v1146_v38 }
 0x409   : > { %2152 = vmatprep.subr.mxu0 %v2413_v1 }
 0x40b   : > { %2128 = vmatpush3.xpose.msk.msra.mxu1 %vm491_vm2, %v991_v58  ;;  %v1144_v39 = vpop.permute.xlu0 %1143 }
 0x40c   : > { %2129 = vmatprep.subr.mxu1 %v2413_v1  ;;  %2153 = vmatpush3.msra.mxu0 %v1144_v39 }
 0x40d   : > { %2154 = vmatprep.subr.mxu0 %v2413_v1 }
 0x40f   : > { %2130 = vmatpush3.xpose.msk.msra.mxu1 %vm491_vm2, %v989_v40  ;;  %v1142_v42 = vpop.permute.xlu0 %1141 }
 0x410   : > { %2131 = vmatprep.subr.mxu1 %v2413_v1  ;;  %2155 = vmatpush3.msra.mxu0 %v1142_v42 }
 0x411   : > { %2156 = vmatprep.subr.mxu0 %v2413_v1 }
 0x413   : > { %2132 = vmatpush3.xpose.msk.msra.mxu1 %vm491_vm2, %v987_v59  ;;  %v1140_v43 = vpop.permute.xlu0 %1139 }
 0x414   : > { %2133 = vmatprep.subr.mxu1 %v2413_v1  ;;  %2157 = vmatpush3.msra.mxu0 %v1140_v43 }
 0x415   : > { %2158 = vmatprep.subr.mxu0 %v2413_v1 }
 0x417   : > { %2134 = vmatpush3.xpose.msk.msra.mxu1 %vm491_vm2, %v985_v44  ;;  %v1138_v45 = vpop.permute.xlu0 %1137 }
 0x418   : > { %2135 = vmatprep.subr.mxu1 %v2413_v1  ;;  %2159 = vmatpush3.msra.mxu0 %v1138_v45 }
 0x419   : > { %2160 = vmatprep.subr.mxu0 %v2413_v1 }
 0x41a   : > { %2161 = vmatpush3.msra.mxu0 %v1136_v53 }
 0x41b   : > { %2136 = vmatpush3.xpose.msk.msra.mxu1 %vm491_vm2, %v983_v62  ;;  %v1134_v46 = vpop.permute.xlu0 %1133  ;;  %2162 = vmatprep.subr.mxu0 %v2413_v1 }
 0x41c   : > { %2210 = vmatprep.subr.mxu1 %v2413_v1  ;;  %2163 = vmatpush3.msra.mxu0 %v1134_v46 }
 0x41d   : > { %2164 = vmatprep.subr.mxu0 %v2413_v1 }
 0x41e   : > { %2138 = vmatmul.mubr.msk.f32.vlgmr.msra.gmra.mxu1 %vm491_vm2, %v981_v49 }
 0x41f   : > { %2242 = vmatprep.mubr.msk.f32.mxu1 %vm2414_vm0, %v2413_v1  ;;  %v1132_v50 = vpop.permute.xlu0 %1131 }
 0x420   : > { %2165 = vmatpush3.msra.mxu0 %v1132_v50 }
 0x421   : > { %2166 = vmatprep.subr.mxu0 %v2413_v1 }
 0x423   : > { %v1130_v55 = vpop.permute.xlu0 %1129 }
 0x424   : > { %2167 = vmatpush3.msra.mxu0 %v1130_v55 }
 0x425   : > { %2168 = vmatprep.subr.mxu0 %v2413_v1 }
 0x427   : > { %v1128_v56 = vpop.permute.xlu0 %1127 }
 0x428   : > { %2169 = vmatpush3.msra.mxu0 %v1128_v56 }
 0x429   : > { %2170 = vmatprep.subr.mxu0 %v2413_v1 }
 0x42a   : > { %2171 = vmatpush3.msra.mxu0 %v1126_v11  ;;  %v1525_v11 = vld [vmem:[%s3235_s6 + $0x10] sm:$0xff] }
 0x42b   : > { %2175 = vmatprep.subr.mxu0 %v2413_v1 }
 0x49e   : > { %v3047_v51 = vpop.f32.mrf.mxu1 }
 0x4a0   : > { %v2104_v52 = vpop.f32.mrf.mxu1 }
 0x4de   : > { %v1114_v57 = vpop.f32.mrf.mxu1 }
 0x4df   : > { %v1115_v7 = vadd.f32 %v2831_v60, %v1114_v57  ;;  %v1524_v57 = vld [vmem:[%s3235_s6 + $0x8] sm:$0xff] }
 0x4e0   : > { %v2139_v13 = vpop.f32.mrf.mxu1 }
 0x4e1   : > { %1118 = vmax.xlane.f32.xlu1 %v1115_v7 }
 0x4f2   : > { %1281 = vrot.lane.b32.xlu1 %v2553_v6, %s2417_s21 }
 0x4f6   : > { %1277 = vrot.lane.b32.xlu1 %v2577_v9, %s2417_s21 }
 0x4fa   : > { %1273 = vrot.lane.b32.xlu1 %v2616_v16, %s2417_s21 }
 0x4fe   : > { %1269 = vrot.lane.b32.xlu1 %v2652_v22, %s2417_s21 }
 0x502   : > { %1265 = vrot.lane.b32.xlu1 %v2661_v23, %s2417_s21 }
 0x506   : > { %1261 = vrot.lane.b32.xlu1 %v2669_v24, %s2417_s21 }
 0x50a   : > { %1257 = vrot.lane.b32.xlu1 %v2677_v25, %s2417_s21 }
 0x50e   : > { %1253 = vrot.lane.b32.xlu1 %v2688_v27, %s2417_s21 }
 0x512   : > { %1426 = vrot.lane.b32.xlu1 %v2569_v8, %s2417_s21 }
 0x516   : > { %1424 = vrot.lane.b32.xlu1 %v2580_v10, %s2417_s21 }
 0x51a   : > { %1422 = vrot.lane.b32.xlu1 %v2590_v12, %s2417_s21 }
 0x51e   : > { %1420 = vrot.lane.b32.xlu1 %v2601_v14, %s2417_s21 }
 0x522   : > { %1418 = vrot.lane.b32.xlu1 %v2608_v15, %s2417_s21 }
 0x526   : > { %1416 = vrot.lane.b32.xlu1 %v2619_v17, %s2417_s21  ;;  %v1284_v17 = vpop.permute.xlu0 %1283 }
 0x52a   : > { %1414 = vrot.lane.b32.xlu1 %v2626_v18, %s2417_s21 }
 0x52e   : > { %1412 = vrot.lane.b32.xlu1 %v2637_v20, %s2417_s21 }
 0x532   : > { %1410 = vrot.lane.b32.xlu1 %v2644_v21, %s2417_s21  ;;  %v1280_v21 = vpop.permute.xlu0 %1279 }
 0x536   : > { %1406 = vrot.lane.b32.xlu1 %v2744_v31, %s2417_s21  ;;  %v1276_v24 = vpop.permute.xlu0 %1275 }
 0x53a   : > { %1404 = vrot.lane.b32.xlu1 %v2749_v32, %s2417_s21  ;;  %v1272_v31 = vpop.permute.xlu0 %1271 }
 0x53e   : > { %1402 = vrot.lane.b32.xlu1 %v2754_v33, %s2417_s21 }
 0x542   : > { %1400 = vrot.lane.b32.xlu1 %v2759_v34, %s2417_s21  ;;  %v1268_v34 = vpop.permute.xlu0 %1267 }
 0x546   : > { %1398 = vrot.lane.b32.xlu1 %v2764_v35, %s2417_s21  ;;  %v1264_v19 = vpop.permute.xlu0 %1263 }
 0x54a   : > { %v1260_v29 = vpop.permute.xlu0 %1259 }
 0x54e   : > { %v1256_v54 = vpop.permute.xlu0 %1255 }
 0x552   : > { %v1252_v58 = vpop.permute.xlu0 %1251 }
 0x556   : > { %v1409_v36 = vpop.permute.xlu0 %1408 }
 0x56a   : > { %836 = vadd.xlane.f32.xlu1 %v2997_v26  ;;  %v1119_v6 = vpop.xlane.xlu1 %1118 }
 0x56b   : > { %v1120_v8 = vsub.f32 %v1115_v7, %v1119_v6  ;;  %v1523_v7 = vld [vmem:[%s3235_s6] sm:$0xff] }
 0x56d   : > { %v1121_v9 = vmul.f32 1.442695, %v1120_v8 }
 0x56e   : > { %618 = vadd.xlane.f32.xlu1 %v2870_v47  ;;  %v1282_v10 = vpop.permute.xlu1 %1281 }
 0x56f   : > { %2323 = vpow2.f32 %v1121_v9 }
 0x572   : > { %v1278_v12 = vpop.permute.xlu1 %1277 }
 0x576   : > { %v1274_v14 = vpop.permute.xlu1 %1273 }
 0x57a   : > { %v1270_v15 = vpop.permute.xlu1 %1269 }
 0x57c   : > { %v3102_v16 = vpop.eup %2323 }
 0x57d   : > { %2173 = vmatmul.mubr.f32.vlgmr.msra.gmra.mxu0 %v3102_v16 }
 0x57e   : > { %2176 = vmatpush3.xpose.msk.msra.mxu0 %vm491_vm2, %v1284_v17  ;;  %v1266_v18 = vpop.permute.xlu1 %1265  ;;  %2207 = vmatprep.mubr.msk.f32.mxu0 %vm2414_vm0, %v2413_v1 }
 0x57f   : > { %2177 = vmatprep.subr.mxu0 %v2413_v1 }
 0x582   : > { %2178 = vmatpush3.xpose.msk.msra.mxu0 %vm491_vm2, %v1282_v10  ;;  %v1262_v20 = vpop.permute.xlu1 %1261 }
 0x583   : > { %2179 = vmatprep.subr.mxu0 %v2413_v1 }
 0x586   : > { %2180 = vmatpush3.xpose.msk.msra.mxu0 %vm491_vm2, %v1280_v21  ;;  %v1258_v22 = vpop.permute.xlu1 %1257 }
 0x587   : > { %2181 = vmatprep.subr.mxu0 %v2413_v1 }
 0x58a   : > { %2182 = vmatpush3.xpose.msk.msra.mxu0 %vm491_vm2, %v1278_v12  ;;  %v1254_v23 = vpop.permute.xlu1 %1253 }
 0x58b   : > { %2183 = vmatprep.subr.mxu0 %v2413_v1 }
 0x58e   : > { %2184 = vmatpush3.xpose.msk.msra.mxu0 %vm491_vm2, %v1276_v24  ;;  %v1427_v25 = vpop.permute.xlu1 %1426 }
 0x58f   : > { %2185 = vmatprep.subr.mxu0 %v2413_v1  ;;  %2211 = vmatpush3.msra.mxu1 %v1427_v25 }
 0x590   : > { %2212 = vmatprep.subr.mxu1 %v2413_v1 }
 0x592   : > { %2186 = vmatpush3.xpose.msk.msra.mxu0 %vm491_vm2, %v1274_v14  ;;  %v1425_v27 = vpop.permute.xlu1 %1424 }
 0x593   : > { %2187 = vmatprep.subr.mxu0 %v2413_v1  ;;  %2213 = vmatpush3.msra.mxu1 %v1425_v27 }
 0x594   : > { %2214 = vmatprep.subr.mxu1 %v2413_v1 }
 0x596   : > { %2188 = vmatpush3.xpose.msk.msra.mxu0 %vm491_vm2, %v1272_v31  ;;  %v1423_v32 = vpop.permute.xlu1 %1422 }
 0x597   : > { %2189 = vmatprep.subr.mxu0 %v2413_v1  ;;  %2215 = vmatpush3.msra.mxu1 %v1423_v32 }
 0x598   : > { %2216 = vmatprep.subr.mxu1 %v2413_v1 }
 0x59a   : > { %2190 = vmatpush3.xpose.msk.msra.mxu0 %vm491_vm2, %v1270_v15  ;;  %v1421_v33 = vpop.permute.xlu1 %1420 }
 0x59b   : > { %2191 = vmatprep.subr.mxu0 %v2413_v1  ;;  %2217 = vmatpush3.msra.mxu1 %v1421_v33 }
 0x59c   : > { %2218 = vmatprep.subr.mxu1 %v2413_v1 }
 0x59e   : > { %2192 = vmatpush3.xpose.msk.msra.mxu0 %vm491_vm2, %v1268_v34  ;;  %v1419_v35 = vpop.permute.xlu1 %1418 }
 0x59f   : > { %2193 = vmatprep.subr.mxu0 %v2413_v1  ;;  %2219 = vmatpush3.msra.mxu1 %v1419_v35 }
 0x5a0   : > { %2220 = vmatprep.subr.mxu1 %v2413_v1 }
 0x5a2   : > { %2194 = vmatpush3.xpose.msk.msra.mxu0 %vm491_vm2, %v1266_v18  ;;  %v1417_v47 = vpop.permute.xlu1 %1416 }
 0x5a3   : > { %2195 = vmatprep.subr.mxu0 %v2413_v1  ;;  %2221 = vmatpush3.msra.mxu1 %v1417_v47 }
 0x5a4   : > { %2222 = vmatprep.subr.mxu1 %v2413_v1 }
 0x5a6   : > { %2196 = vmatpush3.xpose.msk.msra.mxu0 %vm491_vm2, %v1264_v19  ;;  %v1415_v26 = vpop.permute.xlu1 %1414 }
 0x5a7   : > { %2197 = vmatprep.subr.mxu0 %v2413_v1  ;;  %2223 = vmatpush3.msra.mxu1 %v1415_v26 }
 0x5a8   : > { %2224 = vmatprep.subr.mxu1 %v2413_v1 }
 0x5aa   : > { %2198 = vmatpush3.xpose.msk.msra.mxu0 %vm491_vm2, %v1262_v20  ;;  %v1413_v28 = vpop.permute.xlu1 %1412 }
 0x5ab   : > { %2199 = vmatprep.subr.mxu0 %v2413_v1  ;;  %2225 = vmatpush3.msra.mxu1 %v1413_v28 }
 0x5ac   : > { %2226 = vmatprep.subr.mxu1 %v2413_v1 }
 0x5ae   : > { %2200 = vmatpush3.xpose.msk.msra.mxu0 %vm491_vm2, %v1260_v29  ;;  %v1411_v30 = vpop.permute.xlu1 %1410 }
 0x5af   : > { %2201 = vmatprep.subr.mxu0 %v2413_v1  ;;  %2227 = vmatpush3.msra.mxu1 %v1411_v30 }
 0x5b0   : > { %2228 = vmatprep.subr.mxu1 %v2413_v1 }
 0x5b1   : > { %2229 = vmatpush3.msra.mxu1 %v1409_v36 }
 0x5b2   : > { %2202 = vmatpush3.xpose.msk.msra.mxu0 %vm491_vm2, %v1258_v22  ;;  %v1407_v59 = vpop.permute.xlu1 %1406  ;;  %2230 = vmatprep.subr.mxu1 %v2413_v1 }
 0x5b3   : > { %2203 = vmatprep.subr.mxu0 %v2413_v1  ;;  %2231 = vmatpush3.msra.mxu1 %v1407_v59 }
 0x5b4   : > { %2232 = vmatprep.subr.mxu1 %v2413_v1 }
 0x5b6   : > { %2204 = vmatpush3.xpose.msk.msra.mxu0 %vm491_vm2, %v1256_v54  ;;  %v1405_v61 = vpop.permute.xlu1 %1404 }
 0x5b7   : > { %2205 = vmatprep.subr.mxu0 %v2413_v1  ;;  %2233 = vmatpush3.msra.mxu1 %v1405_v61 }
 0x5b8   : > { %2234 = vmatprep.subr.mxu1 %v2413_v1 }
 0x5ba   : > { %2206 = vmatpush3.xpose.msk.msra.mxu0 %vm491_vm2, %v1254_v23  ;;  %v1403_v62 = vpop.permute.xlu1 %1402 }
 0x5bb   : > { %2235 = vmatpush3.msra.mxu1 %v1403_v62 }
 0x5bc   : > { %2236 = vmatprep.subr.mxu1 %v2413_v1 }
 0x5bd   : > { %2208 = vmatmul.mubr.msk.f32.vlgmr.msra.gmra.mxu0 %vm491_vm2, %v1252_v58 }
 0x5be   : > { %v1401_v63 = vpop.permute.xlu1 %1400 }
 0x5bf   : > { %2237 = vmatpush3.msra.mxu1 %v1401_v63 }
 0x5c0   : > { %2238 = vmatprep.subr.mxu1 %v2413_v1 }
 0x5c2   : > { %v1399_v0 = vpop.permute.xlu1 %1398 }
 0x5c3   : > { %2239 = vmatpush3.msra.mxu1 %v1399_v0 }
 0x5c4   : > { %2240 = vmatprep.subr.mxu1 %v2413_v1 }
 0x5f3   : > { %v837_v3 = vpop.xlane.xlu1 %836 }
 0x5f7   : > { %v619_v4 = vpop.xlane.xlu1 %618 }
 0x5f8   : > { %2325 = vrcp.f32 %v619_v4 }
 0x605   : > { %v2326_v5 = vpop.eup %2325 }
 0x606   : > { %v691_v48 = vmul.f32 %v2326_v5, %v2921_v41 }
 0x608   : > { %692 = vst.msk [vmem:[#allocation2] sm:$0xff] %vm491_vm2, %v691_v48 }
 0x63d   : > { %v1239_v37 = vpop.f32.mrf.mxu0 }
 0x63f   : > { %v2174_v38 = vpop.f32.mrf.mxu0 }
 0x67d   : > { %v1385_v41 = vpop.f32.mrf.mxu0 }
 0x67e   : > { %v1386_v39 = vadd.f32 %v2831_v60, %v1385_v41 }
 0x67f   : > { %v2209_v40 = vpop.f32.mrf.mxu0 }
 0x680   : > { %1389 = vmax.xlane.f32.xlu0 %v1386_v39 }
 0x696   : > { %1396 = vrot.lane.b32.xlu0 %v2852_v2, %s2417_s21  ;;  %s346_s21 = sand.u32 1, %s2395_s28  }
 0x697   : > { %s1609_s19 = scalar_lea.sflag [#allocation4], %s346_s21 }
 0x6b5   : > { %1123 = vadd.xlane.f32.xlu0 %v3102_v16 }
 0x709   : > { %v1390_v42 = vpop.xlane.xlu0 %1389 }
 0x70a   : > { %v1391_v43 = vsub.f32 %v1386_v39, %v1390_v42 }
 0x70c   : > { %v1392_v44 = vmul.f32 1.442695, %v1391_v43 }
 0x70d   : > { %v1397_v45 = vpop.permute.xlu0 %1396 }
 0x70e   : > { %2327 = vpow2.f32 %v1392_v44  ;;  %2241 = vmatpush3.msra.mxu1 %v1397_v45 }
 0x70f   : > { %2245 = vmatprep.subr.mxu1 %v2413_v1  ;;  %2329 = vrcp.f32 %v837_v3 }
 0x71b   : > { %v2328_v49 = vpop.eup %2327 }
 0x71c   : > { %1394 = vadd.xlane.f32.xlu0 %v2328_v49  ;;  %2243 = vmatmul.mubr.f32.vlgmr.msra.gmra.mxu1 %v2328_v49  ;;  %v2330_v60 = vpop.eup %2329 }
 0x71d   : > { %2253 = vmatprep.mubr.msk.f32.mxu1 %vm2414_vm0, %v2413_v1  ;;  %v973_v2 = vmul.f32 %v2330_v60, %v3047_v51  ;;  %v1526_v51 = vld [vmem:[%s3235_s6 + $0x18] sm:$0xff] }
 0x71e   : > { %2246 = vmatpush3.msra.mxu1 %v1526_v51 }
 0x71f   : > { %2247 = vmatprep.subr.mxu1 %v2413_v1 }
 0x720   : > { %2248 = vmatpush3.msra.mxu1 %v1525_v11 }
 0x721   : > { %2249 = vmatprep.subr.mxu1 %v2413_v1 }
 0x722   : > { %2250 = vmatpush3.msra.mxu1 %v1524_v57 }
 0x723   : > { %2251 = vmatprep.subr.mxu1 %v2413_v1  ;;  %v1800_v1 = vld [vmem:[%s3236_s7] ss:$0 sm:$0xff] }
 0x724   : > { %2252 = vmatpush3.msra.mxu1 %v1523_v7 }
 0x732   : > { %975 = vrot.lane.b32.xlu0 %v973_v2, %s2418_s22  ;;  %s1723_s22 = sshll.u32 %s346_s21, 3 }
 0x733   : > { %s348_s26 = scalar_lea.vmem [#allocation3], %s1723_s22  ;;  %s2339_s22 = sshll.u32 %s2421_s30, 4  ;;  %s2340_s22 = int_to_ptr.vmem [resolvable:$false] %s2339_s22 }
 0x734   : > { %s1623_s12 = sshll.u32 %s348_s26, 4  ;;  %s1624_s12 = int_to_ptr.vmem [resolvable:$true] %s1623_s12 }
 0x735   : > { %p2342_p1 = scmp.lt.s32.totalorder %s1624_s12, %s2340_s22 }
 0x73e   : > { %v1124_v46 = vpop.xlane.xlu0 %1123 }
 0x73f   : > { %2331 = vrcp.f32 %v1124_v46 }
 0x74c   : > { %v2332_v50 = vpop.eup %2331 }
 0x74d   : > { %v1244_v52 = vmul.f32 %v2332_v50, %v1239_v37 }
 0x74f   : > { %1246 = vrot.lane.b32.xlu1 %v1244_v52, %s2419_s24  ;;  %s2341_s24 = scalar_lea.vmem %s2340_s22, 256 }
 0x7a5   : > { %v1395_v53 = vpop.xlane.xlu0 %1394 }
 0x7a6   : > { %2333 = vrcp.f32 %v1395_v53 }
 0x7a9   : > { %v976_v55 = vpop.permute.xlu0 %975 }
 0x7aa   : > { %979 = vst.msk [vmem:[#allocation2] sm:$0xff] %vm978_vm3, %v976_v55 }
 0x7b3   : > { %v2334_v13 = vpop.eup %2333 }
 0x7c1   : > { %v1247_v56 = vpop.permute.xlu1 %1246 }
 0x7c2   : > { %1250 = vst.msk [vmem:[#allocation2] sm:$0xff] %vm1249_vm4, %v1247_v56 }
 0x7dc   : > { %v1510_v6 = vpop.f32.mrf.mxu1 }
 0x7dd   : > { %v1515_v8 = vmul.f32 %v2334_v13, %v1510_v6 }
 0x7de   : > { %v2244_v9 = vpop.f32.mrf.mxu1 }
 0x7df   : > { %1517 = vrot.lane.b32.xlu1 %v1515_v8, %s2420_s20  ;;  %s2335_s20 = scalar_lea.vmem %s1624_s12, 128 }
 0x7e0   : > { %p2336_p12 = scmp.ne.s32.totalorder %s1624_s12, %s2335_s20  ;;  %p2343_p2 = scmp.lt.s32.totalorder %s2341_s24, %s2335_s20 }
 0x7e2   : > { %p2337_p13 = pnand %p2336_p12, %p2507_p4  ;;  %p2344_p3 = por %p2343_p2, %p2342_p1 }
 0x7e4   : > { %p2338_p0 = pneg %p2337_p13 }
 0x7e6   : > { %p2345_p5 = pnand %p2344_p3, %p2338_p0 }
 0x851   : > { %v1518_v10 = vpop.permute.xlu1 %1517 }
 0x852   : > { %1521 = vst.msk [vmem:[#allocation2] sm:$0xff] %vm1520_vm5, %v1518_v10 }
 0x859   : > { %v1522_v12 = vld [vmem:[#allocation2] sm:$0xff] }
 0x85a   : > { %2254 = vmatmul.mubr.msk.f32.vlgmr.msra.gmra.mxu1 %vm378_vm1, %v1522_v12 }
 0x91a   : > { %v1603_v14 = vpop.f32.mrf.mxu1 }
 0x91b   : > { %v1604_v15 = vadd.f32 %v1800_v1, %v1603_v14 }
 0x91c   : > { %v2255_v16 = vpop.f32.mrf.mxu1 }
 0x91d   : > { %1607 = vst.msk [vmem:[%s348_s26] sm:$0xff] %vm378_vm1, %v1604_v15 }
 0x91e   : > { %2348 = shalt.err (!%p2345_p5)
}
 0x91f   : > { %s2349_s23 = scalar_lea.hbm %s3188_s16, 128  ;;  %s2353_s26 = scalar_lea.hbm %s3237_s8, 256 }
 0x920   : > { %p2350_p6 = scmp.ne.s32.totalorder %s3188_s16, %s2349_s23  ;;  %p2354_p10 = scmp.lt.s32.totalorder %s3188_s16, %s3237_s8 }
 0x921   : > { %p2355_p11 = scmp.lt.s32.totalorder %s2353_s26, %s2349_s23 }
 0x922   : > { %p2351_p7 = pnand %p2350_p6, %p2507_p4 }
 0x923   : > { %p2356_p12 = por %p2355_p11, %p2354_p10 }
 0x924   : > { %p2352_p9 = pneg %p2351_p7 }
 0x926   : > { %p2357_p13 = pnand %p2356_p12, %p2352_p9 }
 0x928   : > { %2360 = shalt.err (!%p2357_p13)
}
 0x929   : > { %2256 = dma.vmem_to_hbm [thread:$0]  (%p2507_p4), %s1624_s12, 128, %s3188_s16, %s1609_s19  }
 0x92a PF: > { %p2262_p0 = scmp.ge.s32.totalorder %s2411_s10, 2  ;;  %s1635_s20 = sand.u32 1, %s2391_s27  }
 0x92b   : > { %s1636_s30 = scalar_lea.sflag [#allocation4], %s1635_s20 }
 0x92c   : > { %p2259_p1 = pnand %p2262_p0, %p2514_p8 }
 0x92e   : > { %p2260_p2 = pneg %p2259_p1 }
 0x930   : > { %2386 = dma.done.wait (%p2260_p2), %s1636_s30, 128  }
 0x931   : > { %2388 = vsyncadd (%p2260_p2), %s1636_s30, 4294967168  ;;  %s21_s10 = sadd.s32 1, %s2411_s10   ;;  %s3240_s27 = smov %s2395_s28 }
 0x932   : > { %p18_p3 = scmp.ge.s32.totalorder %s21_s10, 4   ;;  %s3241_s28 = smov %s2399_s29 }
 0x933   : > { %s3242_s29 = smov %s2520_s18  ;;  %s3243_s30 = smov %s2407_s9 }
 0x934   : > { %s3244_s9 = smov %s3246_s13  ;;  %20 = sbr.rel (!%p18_p3) target bundleno = 4 (0x4), region = 93 }
 0x939   :  { %1641 = vsyncpa [#allocation4], 1 }
 0x93a   :  { %1643 = vsyncpa [#allocation4 + $0x1], 1 }

// kernel: tpu_custom_call.1
= control target key start
LH: loop header
LB: loop body
LE: loop exit
PB: predicated region body
PF: predicated region fallthrough
CT: control target
= control target key end

     0   :  { %13 = vsyncpa [#allocation4], 0  ;;  %s3229_s0 = inlined_call_operand.vmem [shape: f32[2,8,32], index: 0, kind: input, shape index: {}]   ;;  %s3230_s1 = inlined_call_operand.vmem [shape: f32[2,128,32], index: 1, kind: input, shape index: {}]   ;;  %s3231_s2 = inlined_call_operand.vmem [shape: f32[2,128,32], index: 2, kind: input, shape index: {}]   ;;  %s3232_s3 = inlined_call_operand.vmem [shape: f32[1,128], index: 3, kind: input, shape index: {}]   ;;  %s3233_s4 = inlined_call_operand.vmem [shape: f32[32,32], index: 4, kind: input, shape index: {}]   ;;  %s3234_s5 = inlined_call_operand.vmem [shape: f32[1,32], index: 5, kind: input, shape index: {}]   ;;  %s3235_s6 = inlined_call_operand.vmem [shape: f32[32,32], index: 6, kind: input, shape index: {}]   ;;  %s3236_s7 = inlined_call_operand.vmem [shape: f32[1,32], index: 7, kind: input, shape index: {}]   ;;  %s3237_s8 = inlined_call_operand.hbm [shape: f32[2,8,32], index: 8, kind: output, shape index: {}]  }
   0x1   :  { %15 = vsyncpa [#allocation4 + $0x1], 0  ;;  %s2467_s27 = smov 0   ;;  %s2469_s28 = smov 0  }
   0x2   :  { %s2471_s29 = smov 0   ;;  %s2473_s30 = smov 0  }
   0x3   :  { %s2475_s9 = smov 0   ;;  %s2477_s10 = smov 0  }
   0x4 LB: > { %s1718_s11 = sadd.s32 4294967295, %s2411_s10   ;;  %s1719_s12 = sadd.s32 4294967294, %s2411_s10   ;;  %s2411_s10 = sphi %s2477_s10, %s21_s10   ;;  %s2407_s9 = sphi %s2475_s9, %s3244_s9   ;;  %s2403_s30 = sphi %s2473_s30, %s3243_s30   ;;  %s2399_s29 = sphi %s2471_s29, %s3242_s29   ;;  %s2395_s28 = sphi %s2469_s28, %s3241_s28   ;;  %s2391_s27 = sphi %s2467_s27, %s3240_s27  }
   0x5   : > { %s33_s13 = sadd.s32 1, %s2407_s9  ;;  %s227_s14 = sadd.s32 1, %s2399_s29 }
   0x6   : > { %p35_p0 = scmp.ge.s32.totalorder %s33_s13, 2  ;;  %p237_p1 = scmp.ne.s32.totalorder %s2399_s29, %s2395_s28 }
   0x7   : > { %p238_p2 = scmp.eq.s32.totalorder %s1718_s11, 1  ;;  %p243_p3 = scmp.ne.s32.totalorder %s2395_s28, %s2391_s27 }
   0x8   : > { %s3246_s13 = smov (%p35_p0, %s33_s13), 0  ;;  %p244_p5 = scmp.eq.s32.totalorder %s1719_s12, 1 }
   0x9   : > { %p2507_p4 = por %p238_p2, %p237_p1  ;;  %s222_s16 = ssub.s32 %s2407_s9, %s3246_s13 }
   0xa   : > { %p1722_p6 = scmp.ge.s32.totalorder %s2411_s10, 1  ;;  %p225_p7 = scmp.eq.s32.totalorder %s222_s16, 0 }
   0xb   : > { %p2514_p8 = por %p244_p5, %p243_p3  ;;  %p303_p9 = scmp.lt.s32.totalorder %s2411_s10, 3 }
   0xc   : > { %s2520_s18 = scalar_select %p225_p7, %s2399_s29, %s227_s14  }
   0xd   : > { %p304_p10 = pnand %p1722_p6, %p303_p9 }
   0xe   : > { %p349_p11 = scmp.lt.s32.totalorder (!%p304_p10), %s2403_s30, 1  ;;  %s2415_s12 = smov (!%p304_p10), 120  }
   0xf   : > { %307 = sbr.rel (%p304_p10) target bundleno = 2346 (0x92a), region = 52  ;;  %s2417_s21 = smov (!%p304_p10), 104  }
  0x10   : > { %s2418_s22 = smov (!%p304_p10), 8   ;;  %s1803_s25 = sshll.u32 (!%p304_p10), %s2403_s30, 7 }
  0x11   : > { %s3188_s16 = scalar_lea.hbm (!%p304_p10), %s3237_s8, %s1803_s25 }
  0x14   : > { %v370_v0 = vld [vmem:[%s3233_s4 + $0x18] sm:$0xff]  ;;  %v2413_v1 = vmov 0.0   ;;  %v369_v2 = vld [vmem:[%s3233_s4 + $0x10] sm:$0xff]  ;;  %vm2414_vm0 = vmmov 0   ;;  %s350_s23 = scalar_select %p349_p11, %s2403_s30, 1  ;;  %v368_v3 = vld [vmem:[%s3233_s4 + $0x8] sm:$0xff] }
  0x15   : > { %1954 = vmatprep.subr.mxu0 %v2413_v1  ;;  %1962 = vmatprep.mubr.msk.f32.mxu0 %vm2414_vm0, %v2413_v1  ;;  %v367_v4 = vld [vmem:[%s3233_s4] sm:$0xff]  ;;  %vm378_vm1 = vcmask 261120   ;;  %vm491_vm2 = vcmask 64512   ;;  %vm978_vm3 = vcmask 130112   ;;  %vm1249_vm4 = vcmask 195712   ;;  %s2421_s30 = smov [#allocation3]  }
  0x16   : > { %1955 = vmatpush3.msra.mxu0 %v370_v0  ;;  %1965 = vmatprep.subr.mxu1 %v2413_v1  ;;  %s1724_s26 = sshll.u32 %s350_s23, 3  ;;  %s1806_s11 = sshll.u32 %s350_s23, 7  ;;  %v1729_v52 = vld [vmem:[%s3234_s5] ss:$0 sm:$0xff]  ;;  %vm1520_vm5 = vcmask 261312  }
  0x17   : > { %1956 = vmatprep.subr.mxu0 %v2413_v1  ;;  %1997 = vmatprep.mubr.msk.f32.mxu1 %vm2414_vm0, %v2413_v1  ;;  %s355_s20 = scalar_lea.vmem %s3229_s0, %s1724_s26  ;;  %s2550_s24 = scalar_lea.vmem %s3230_s1, %s1806_s11  ;;  %v2831_v60 = vld [vmem:[%s3232_s3] ss:$0 sm:$0xff] }
  0x18   : > { %1957 = vmatpush3.msra.mxu0 %v369_v2  ;;  %v366_v5 = vld [vmem:[%s355_s20] sm:$0xff]  ;;  %v2553_v6 = vld [vmem:[%s2550_s24 + $0x70] sm:$0xff]  ;;  %s2559_s26 = scalar_lea.vmem %s3231_s2, %s1806_s11  ;;  %v2564_v7 = vld [vmem:[%s2550_s24 + $0x68] sm:$0xff]  ;;  %s2416_s11 = smov 112  }
  0x19   : > { %1958 = vmatprep.subr.mxu0 %v2413_v1  ;;  %723 = vrot.lane.b32.xlu1 %v2553_v6, %s2415_s12  ;;  %v2569_v8 = vld [vmem:[%s2559_s26 + $0x78] sm:$0xff]  ;;  %v2577_v9 = vld [vmem:[%s2550_s24 + $0x60] sm:$0xff]  ;;  %v2580_v10 = vld [vmem:[%s2559_s26 + $0x70] sm:$0xff]  ;;  %s2420_s20 = smov 24  }
  0x1a   : > { %1959 = vmatpush3.msra.mxu0 %v368_v3  ;;  %v2583_v11 = vld [vmem:[%s2550_s24 + $0x78] sm:$0xff]  ;;  %v2590_v12 = vld [vmem:[%s2559_s26 + $0x68] sm:$0xff]  ;;  %v2601_v14 = vld [vmem:[%s2559_s26 + $0x60] sm:$0xff] }
  0x1b   : > { %1960 = vmatprep.subr.mxu0 %v2413_v1  ;;  %1966 = vmatpush3.xpose.msk.msra.mxu1 %vm491_vm2, %v2583_v11  ;;  %v2598_v13 = vld [vmem:[%s2550_s24 + $0x58] sm:$0xff]  ;;  %v2616_v16 = vld [vmem:[%s2550_s24 + $0x50] sm:$0xff]  ;;  %v2626_v18 = vld [vmem:[%s2559_s26 + $0x48] sm:$0xff] }
  0x1c   : > { %1961 = vmatpush3.msra.mxu0 %v367_v4  ;;  %1967 = vmatprep.subr.mxu1 %v2413_v1  ;;  %v2608_v15 = vld [vmem:[%s2559_s26 + $0x58] sm:$0xff]  ;;  %v2619_v17 = vld [vmem:[%s2559_s26 + $0x50] sm:$0xff]  ;;  %v2634_v19 = vld [vmem:[%s2550_s24 + $0x48] sm:$0xff] }
  0x1d   : > { %1963 = vmatmul.mubr.msk.f32.vlgmr.msra.gmra.mxu0 %vm378_vm1, %v366_v5  ;;  %2000 = vmatprep.subr.mxu0 %v2413_v1  ;;  %v2637_v20 = vld [vmem:[%s2559_s26 + $0x40] sm:$0xff]  ;;  %v2644_v21 = vld [vmem:[%s2559_s26 + $0x38] sm:$0xff]  ;;  %v2661_v23 = vld [vmem:[%s2550_s24 + $0x30] sm:$0xff] }
  0x1e   : > { %2032 = vmatprep.mubr.msk.f32.mxu0 %vm2414_vm0, %v2413_v1  ;;  %721 = vrot.lane.b32.xlu1 %v2564_v7, %s2415_s12  ;;  %v2652_v22 = vld [vmem:[%s2550_s24 + $0x40] sm:$0xff]  ;;  %v2677_v25 = vld [vmem:[%s2550_s24 + $0x10] sm:$0xff]  ;;  %v2683_v26 = vld [vmem:[%s2550_s24 + $0x38] sm:$0xff] }
  0x1f   : > { %2001 = vmatpush3.msra.mxu0 %v2569_v8  ;;  %1968 = vmatpush3.xpose.msk.msra.mxu1 %vm491_vm2, %v2553_v6  ;;  %v2669_v24 = vld [vmem:[%s2550_s24 + $0x20] sm:$0xff]  ;;  %v2699_v28 = vld [vmem:[%s2550_s24 + $0x28] sm:$0xff]  ;;  %v2712_v29 = vld [vmem:[%s2550_s24 + $0x18] sm:$0xff] }
  0x20   : > { %2002 = vmatprep.subr.mxu0 %v2413_v1  ;;  %1969 = vmatprep.subr.mxu1 %v2413_v1  ;;  %v2688_v27 = vld [vmem:[%s2550_s24] sm:$0xff]  ;;  %v2725_v30 = vld [vmem:[%s2550_s24 + $0x8] sm:$0xff]  ;;  %v2754_v33 = vld [vmem:[%s2559_s26 + $0x18] sm:$0xff]  ;;  %s2419_s24 = smov 16  }
  0x21   : > { %2003 = vmatpush3.msra.mxu0 %v2580_v10  ;;  %v2744_v31 = vld [vmem:[%s2559_s26 + $0x28] sm:$0xff]  ;;  %v2749_v32 = vld [vmem:[%s2559_s26 + $0x20] sm:$0xff]  ;;  %v2759_v34 = vld [vmem:[%s2559_s26 + $0x10] sm:$0xff] }
  0x22   : > { %2004 = vmatprep.subr.mxu0 %v2413_v1  ;;  %719 = vrot.lane.b32.xlu1 %v2577_v9, %s2415_s12  ;;  %v2764_v35 = vld [vmem:[%s2559_s26 + $0x8] sm:$0xff]  ;;  %v2835_v0 = vld [vmem:[%s2559_s26 + $0x30] sm:$0xff]  ;;  %v2852_v2 = vld [vmem:[%s2559_s26] sm:$0xff] }
  0x23   : > { %2005 = vmatpush3.msra.mxu0 %v2590_v12  ;;  %1970 = vmatpush3.xpose.msk.msra.mxu1 %vm491_vm2, %v2564_v7 }
  0x24   : > { %2006 = vmatprep.subr.mxu0 %v2413_v1  ;;  %1971 = vmatprep.subr.mxu1 %v2413_v1 }
  0x25   : > { %2007 = vmatpush3.msra.mxu0 %v2601_v14 }
  0x26   : > { %2008 = vmatprep.subr.mxu0 %v2413_v1  ;;  %717 = vrot.lane.b32.xlu1 %v2598_v13, %s2415_s12 }
  0x27   : > { %2009 = vmatpush3.msra.mxu0 %v2608_v15  ;;  %1972 = vmatpush3.xpose.msk.msra.mxu1 %vm491_vm2, %v2577_v9 }
  0x28   : > { %2010 = vmatprep.subr.mxu0 %v2413_v1  ;;  %1973 = vmatprep.subr.mxu1 %v2413_v1 }
  0x29   : > { %2011 = vmatpush3.msra.mxu0 %v2619_v17 }
  0x2a   : > { %2012 = vmatprep.subr.mxu0 %v2413_v1  ;;  %715 = vrot.lane.b32.xlu1 %v2616_v16, %s2415_s12 }
  0x2b   : > { %2013 = vmatpush3.msra.mxu0 %v2626_v18  ;;  %1974 = vmatpush3.xpose.msk.msra.mxu1 %vm491_vm2, %v2598_v13 }
  0x2c   : > { %2014 = vmatprep.subr.mxu0 %v2413_v1  ;;  %1975 = vmatprep.subr.mxu1 %v2413_v1 }
  0x2d   : > { %2015 = vmatpush3.msra.mxu0 %v2637_v20 }
  0x2e   : > { %2016 = vmatprep.subr.mxu0 %v2413_v1  ;;  %713 = vrot.lane.b32.xlu1 %v2634_v19, %s2415_s12 }
  0x2f   : > { %2017 = vmatpush3.msra.mxu0 %v2644_v21  ;;  %1976 = vmatpush3.xpose.msk.msra.mxu1 %vm491_vm2, %v2616_v16 }
  0x30   : > { %2018 = vmatprep.subr.mxu0 %v2413_v1  ;;  %1977 = vmatprep.subr.mxu1 %v2413_v1 }
  0x31   : > { %2019 = vmatpush3.msra.mxu0 %v2835_v0 }
  0x32   : > { %711 = vrot.lane.b32.xlu1 %v2652_v22, %s2415_s12  ;;  %2020 = vmatprep.subr.mxu0 %v2413_v1 }
  0x33   : > { %1978 = vmatpush3.xpose.msk.msra.mxu1 %vm491_vm2, %v2634_v19  ;;  %2021 = vmatpush3.msra.mxu0 %v2744_v31 }
  0x34   : > { %1979 = vmatprep.subr.mxu1 %v2413_v1  ;;  %2022 = vmatprep.subr.mxu0 %v2413_v1 }
  0x35   : > { %2023 = vmatpush3.msra.mxu0 %v2749_v32 }
  0x36   : > { %707 = vrot.lane.b32.xlu1 %v2661_v23, %s2415_s12  ;;  %2024 = vmatprep.subr.mxu0 %v2413_v1 }
  0x37   : > { %1980 = vmatpush3.xpose.msk.msra.mxu1 %vm491_vm2, %v2652_v22  ;;  %2025 = vmatpush3.msra.mxu0 %v2754_v33 }
  0x38   : > { %1981 = vmatprep.subr.mxu1 %v2413_v1  ;;  %2026 = vmatprep.subr.mxu0 %v2413_v1 }
  0x39   : > { %2027 = vmatpush3.msra.mxu0 %v2759_v34 }
  0x3a   : > { %703 = vrot.lane.b32.xlu1 %v2669_v24, %s2415_s12  ;;  %2028 = vmatprep.subr.mxu0 %v2413_v1 }
  0x3b   : > { %1982 = vmatpush3.xpose.msk.msra.mxu1 %vm491_vm2, %v2683_v26  ;;  %2029 = vmatpush3.msra.mxu0 %v2764_v35 }
  0x3c   : > { %1983 = vmatprep.subr.mxu1 %v2413_v1  ;;  %2030 = vmatprep.subr.mxu0 %v2413_v1 }
  0x3d   : > { %2031 = vmatpush3.msra.mxu0 %v2852_v2 }
  0x3e   : > { %699 = vrot.lane.b32.xlu1 %v2677_v25, %s2415_s12  ;;  %2035 = vmatprep.subr.mxu0 %v2413_v1 }
  0x3f   : > { %1984 = vmatpush3.xpose.msk.msra.mxu1 %vm491_vm2, %v2661_v23 }
  0x40   : > { %1985 = vmatprep.subr.mxu1 %v2413_v1 }
  0x42   : > { %695 = vrot.lane.b32.xlu1 %v2688_v27, %s2415_s12 }
  0x43   : > { %1986 = vmatpush3.xpose.msk.msra.mxu1 %vm491_vm2, %v2699_v28 }
  0x44   : > { %1987 = vmatprep.subr.mxu1 %v2413_v1 }
  0x46   : > { %884 = vrot.lane.b32.xlu1 %v2569_v8, %s2415_s12 }
  0x47   : > { %1988 = vmatpush3.xpose.msk.msra.mxu1 %vm491_vm2, %v2669_v24 }
  0x48   : > { %1989 = vmatprep.subr.mxu1 %v2413_v1 }
  0x4a   : > { %882 = vrot.lane.b32.xlu1 %v2580_v10, %s2415_s12 }
  0x4b   : > { %1990 = vmatpush3.xpose.msk.msra.mxu1 %vm491_vm2, %v2712_v29 }
  0x4c   : > { %1991 = vmatprep.subr.mxu1 %v2413_v1 }
  0x4e   : > { %880 = vrot.lane.b32.xlu1 %v2590_v12, %s2415_s12 }
  0x4f   : > { %1992 = vmatpush3.xpose.msk.msra.mxu1 %vm491_vm2, %v2677_v25 }
  0x50   : > { %1993 = vmatprep.subr.mxu1 %v2413_v1 }
  0x52   : > { %878 = vrot.lane.b32.xlu1 %v2601_v14, %s2415_s12 }
  0x53   : > { %1994 = vmatpush3.xpose.msk.msra.mxu1 %vm491_vm2, %v2725_v30 }
  0x54   : > { %1995 = vmatprep.subr.mxu1 %v2413_v1 }
  0x56   : > { %876 = vrot.lane.b32.xlu1 %v2608_v15, %s2415_s12 }
  0x57   : > { %1996 = vmatpush3.xpose.msk.msra.mxu1 %vm491_vm2, %v2688_v27 }
  0x58   : > { %2070 = vmatprep.subr.mxu1 %v2413_v1 }
  0x5a   : > { %874 = vrot.lane.b32.xlu1 %v2619_v17, %s2415_s12 }
  0x5e   : > { %872 = vrot.lane.b32.xlu1 %v2626_v18, %s2415_s12 }
  0x62   : > { %870 = vrot.lane.b32.xlu1 %v2637_v20, %s2415_s12 }
  0x66   : > { %868 = vrot.lane.b32.xlu1 %v2644_v21, %s2415_s12 }
  0x6a   : > { %864 = vrot.lane.b32.xlu1 %v2744_v31, %s2415_s12 }
  0x6e   : > { %862 = vrot.lane.b32.xlu1 %v2749_v32, %s2415_s12 }
  0x72   : > { %860 = vrot.lane.b32.xlu1 %v2754_v33, %s2415_s12 }
  0x76   : > { %858 = vrot.lane.b32.xlu1 %v2759_v34, %s2415_s12 }
  0x7a   : > { %856 = vrot.lane.b32.xlu1 %v2764_v35, %s2415_s12 }
  0x7e   : > { %1012 = vrot.lane.b32.xlu1 %v2583_v11, %s2416_s11 }
  0x82   : > { %1008 = vrot.lane.b32.xlu1 %v2564_v7, %s2416_s11 }
  0x86   : > { %1004 = vrot.lane.b32.xlu1 %v2598_v13, %s2416_s11 }
  0x8a   : > { %1000 = vrot.lane.b32.xlu1 %v2634_v19, %s2416_s11 }
  0x8b   : > { %v2776_v36 = vpop.permute.xlu1 %723 }
  0x8e   : > { %996 = vrot.lane.b32.xlu1 %v2683_v26, %s2416_s11 }
  0x90   : > { %v2780_v37 = vpop.permute.xlu1 %721 }
  0x92   : > { %992 = vrot.lane.b32.xlu1 %v2699_v28, %s2416_s11 }
  0x94   : > { %v2784_v38 = vpop.permute.xlu1 %719 }
  0x96   : > { %988 = vrot.lane.b32.xlu1 %v2712_v29, %s2416_s11 }
  0x98   : > { %v2788_v39 = vpop.permute.xlu1 %717 }
  0x9a   : > { %984 = vrot.lane.b32.xlu1 %v2725_v30, %s2416_s11 }
  0x9c   : > { %v2792_v40 = vpop.permute.xlu1 %715 }
  0xa0   : > { %v2794_v41 = vpop.permute.xlu1 %713 }
  0xa4   : > { %v2796_v42 = vpop.permute.xlu1 %711 }
  0xa8   : > { %v2798_v43 = vpop.permute.xlu1 %707 }
  0xac   : > { %v2800_v44 = vpop.permute.xlu1 %703 }
  0xb0   : > { %v2802_v45 = vpop.permute.xlu1 %699 }
  0xb4   : > { %v2804_v46 = vpop.permute.xlu1 %695 }
  0xb8   : > { %v885_v47 = vpop.permute.xlu1 %884 }
  0xbc   : > { %v883_v48 = vpop.permute.xlu1 %882 }
  0xc0   : > { %v881_v49 = vpop.permute.xlu1 %880 }
  0xc4   : > { %v879_v50 = vpop.permute.xlu1 %878 }
  0xc8   : > { %v877_v51 = vpop.permute.xlu1 %876 }
  0xcc   : > { %v875_v55 = vpop.permute.xlu1 %874 }
  0xd0   : > { %v873_v57 = vpop.permute.xlu1 %872 }
  0xd4   : > { %v871_v58 = vpop.permute.xlu1 %870 }
  0xd8   : > { %v869_v59 = vpop.permute.xlu1 %868 }
  0xdd   : > { %v448_v53 = vpop.f32.mrf.mxu0 }
  0xde   : > { %v2809_v54 = vadd.f32 %v1729_v52, %v448_v53 }
  0xdf   : > { %v1964_v56 = vpop.f32.mrf.mxu0 }
  0xe0   : > { %980 = vrot.lane.b32.xlu1 %v2809_v54, %s2416_s11  ;;  %1998 = vmatmul.mubr.msk.f32.vlgmr.msra.gmra.mxu1 %vm491_vm2, %v2809_v54 }
  0xe1   : > { %2071 = vmatpush3.msra.mxu1 %v885_v47  ;;  %2102 = vmatprep.mubr.msk.f32.mxu1 %vm2414_vm0, %v2413_v1 }
  0xe2   : > { %2072 = vmatprep.subr.mxu1 %v2413_v1 }
  0xe3   : > { %2073 = vmatpush3.msra.mxu1 %v883_v48 }
  0xe4   : > { %2074 = vmatprep.subr.mxu1 %v2413_v1  ;;  %1135 = vrot.lane.b32.xlu1 %v2744_v31, %s2416_s11 }
  0xe5   : > { %2075 = vmatpush3.msra.mxu1 %v881_v49 }
  0xe6   : > { %2076 = vmatprep.subr.mxu1 %v2413_v1 }
  0xe7   : > { %2077 = vmatpush3.msra.mxu1 %v879_v50 }
  0xe8   : > { %2078 = vmatprep.subr.mxu1 %v2413_v1  ;;  %1125 = vrot.lane.b32.xlu1 %v2852_v2, %s2416_s11 }
  0xe9   : > { %2079 = vmatpush3.msra.mxu1 %v877_v51 }
  0xea   : > { %2080 = vmatprep.subr.mxu1 %v2413_v1 }
  0xeb   : > { %2081 = vmatpush3.msra.mxu1 %v875_v55 }
  0xec   : > { %2082 = vmatprep.subr.mxu1 %v2413_v1 }
  0xed   : > { %2083 = vmatpush3.msra.mxu1 %v873_v57 }
  0xee   : > { %2084 = vmatprep.subr.mxu1 %v2413_v1 }
  0xef   : > { %2085 = vmatpush3.msra.mxu1 %v871_v58 }
  0xf0   : > { %2086 = vmatprep.subr.mxu1 %v2413_v1 }
  0xf1   : > { %2087 = vmatpush3.msra.mxu1 %v869_v59 }
  0xf2   : > { %2088 = vmatprep.subr.mxu1 %v2413_v1 }
 0x1a0   : > { %v609_v61 = vpop.f32.mrf.mxu1 }
 0x1a1   : > { %v610_v62 = vadd.f32 %v2831_v60, %v609_v61 }
 0x1a2   : > { %v1999_v63 = vpop.f32.mrf.mxu1 }
 0x1a3   : > { %613 = vmax.xlane.f32.xlu0 %v610_v62 }
 0x1b9   : > { %725 = vrot.lane.b32.xlu0 %v2583_v11, %s2415_s12 }
 0x1bd   : > { %709 = vrot.lane.b32.xlu0 %v2683_v26, %s2415_s12 }
 0x1c1   : > { %705 = vrot.lane.b32.xlu0 %v2699_v28, %s2415_s12 }
 0x1c5   : > { %701 = vrot.lane.b32.xlu0 %v2712_v29, %s2415_s12 }
 0x1c9   : > { %697 = vrot.lane.b32.xlu0 %v2725_v30, %s2415_s12 }
 0x1cd   : > { %693 = vrot.lane.b32.xlu0 %v2809_v54, %s2415_s12 }
 0x1d1   : > { %866 = vrot.lane.b32.xlu0 %v2835_v0, %s2415_s12 }
 0x22c   : > { %v614_v3 = vpop.xlane.xlu0 %613 }
 0x22d   : > { %v615_v4 = vsub.f32 %v610_v62, %v614_v3 }
 0x22f   : > { %v616_v5 = vmul.f32 1.442695, %v615_v4 }
 0x230   : > { %v726_v48 = vpop.permute.xlu0 %725 }
 0x231   : > { %2319 = vpow2.f32 %v616_v5 }
 0x23e   : > { %v2870_v47 = vpop.eup %2319 }
 0x23f   : > { %2033 = vmatmul.mubr.f32.vlgmr.msra.gmra.mxu0 %v2870_v47 }
 0x240   : > { %2036 = vmatpush3.xpose.msk.msra.mxu0 %vm491_vm2, %v726_v48  ;;  %2067 = vmatprep.mubr.msk.f32.mxu0 %vm2414_vm0, %v2413_v1 }
 0x241   : > { %2037 = vmatprep.subr.mxu0 %v2413_v1 }
 0x244   : > { %2038 = vmatpush3.xpose.msk.msra.mxu0 %vm491_vm2, %v2776_v36  ;;  %v710_v36 = vpop.permute.xlu0 %709 }
 0x245   : > { %2039 = vmatprep.subr.mxu0 %v2413_v1 }
 0x248   : > { %2040 = vmatpush3.xpose.msk.msra.mxu0 %vm491_vm2, %v2780_v37  ;;  %v706_v37 = vpop.permute.xlu0 %705 }
 0x249   : > { %2041 = vmatprep.subr.mxu0 %v2413_v1 }
 0x24c   : > { %2042 = vmatpush3.xpose.msk.msra.mxu0 %vm491_vm2, %v2784_v38  ;;  %v702_v38 = vpop.permute.xlu0 %701 }
 0x24d   : > { %2043 = vmatprep.subr.mxu0 %v2413_v1 }
 0x250   : > { %2044 = vmatpush3.xpose.msk.msra.mxu0 %vm491_vm2, %v2788_v39  ;;  %v698_v39 = vpop.permute.xlu0 %697 }
 0x251   : > { %2045 = vmatprep.subr.mxu0 %v2413_v1 }
 0x254   : > { %2046 = vmatpush3.xpose.msk.msra.mxu0 %vm491_vm2, %v2792_v40  ;;  %v694_v40 = vpop.permute.xlu0 %693 }
 0x255   : > { %2047 = vmatprep.subr.mxu0 %v2413_v1 }
 0x258   : > { %2048 = vmatpush3.xpose.msk.msra.mxu0 %vm491_vm2, %v2794_v41  ;;  %v867_v49 = vpop.permute.xlu0 %866 }
 0x259   : > { %2049 = vmatprep.subr.mxu0 %v2413_v1  ;;  %2089 = vmatpush3.msra.mxu1 %v867_v49 }
 0x25a   : > { %2090 = vmatprep.subr.mxu1 %v2413_v1 }
 0x25c   : > { %2050 = vmatpush3.xpose.msk.msra.mxu0 %vm491_vm2, %v2796_v42 }
 0x25d   : > { %2051 = vmatprep.subr.mxu0 %v2413_v1 }
 0x260   : > { %2052 = vmatpush3.xpose.msk.msra.mxu0 %vm491_vm2, %v710_v36 }
 0x261   : > { %2053 = vmatprep.subr.mxu0 %v2413_v1 }
 0x264   : > { %2054 = vmatpush3.xpose.msk.msra.mxu0 %vm491_vm2, %v2798_v43  ;;  %v865_v43 = vpop.permute.xlu1 %864 }
 0x265   : > { %2055 = vmatprep.subr.mxu0 %v2413_v1  ;;  %2091 = vmatpush3.msra.mxu1 %v865_v43 }
 0x266   : > { %2092 = vmatprep.subr.mxu1 %v2413_v1 }
 0x268   : > { %2056 = vmatpush3.xpose.msk.msra.mxu0 %vm491_vm2, %v706_v37 }
 0x269   : > { %2057 = vmatprep.subr.mxu0 %v2413_v1 }
 0x26c   : > { %2058 = vmatpush3.xpose.msk.msra.mxu0 %vm491_vm2, %v2800_v44  ;;  %v863_v44 = vpop.permute.xlu1 %862 }
 0x26d   : > { %2059 = vmatprep.subr.mxu0 %v2413_v1  ;;  %2093 = vmatpush3.msra.mxu1 %v863_v44 }
 0x26e   : > { %2094 = vmatprep.subr.mxu1 %v2413_v1 }
 0x270   : > { %2060 = vmatpush3.xpose.msk.msra.mxu0 %vm491_vm2, %v702_v38 }
 0x271   : > { %2061 = vmatprep.subr.mxu0 %v2413_v1 }
 0x274   : > { %2062 = vmatpush3.xpose.msk.msra.mxu0 %vm491_vm2, %v2802_v45  ;;  %v861_v45 = vpop.permute.xlu1 %860 }
 0x275   : > { %2063 = vmatprep.subr.mxu0 %v2413_v1  ;;  %2095 = vmatpush3.msra.mxu1 %v861_v45 }
 0x276   : > { %2096 = vmatprep.subr.mxu1 %v2413_v1 }
 0x278   : > { %2064 = vmatpush3.xpose.msk.msra.mxu0 %vm491_vm2, %v698_v39 }
 0x279   : > { %2065 = vmatprep.subr.mxu0 %v2413_v1 }
 0x27c   : > { %2066 = vmatpush3.xpose.msk.msra.mxu0 %vm491_vm2, %v2804_v46  ;;  %v859_v46 = vpop.permute.xlu1 %858 }
 0x27d   : > { %2140 = vmatprep.subr.mxu0 %v2413_v1  ;;  %2097 = vmatpush3.msra.mxu1 %v859_v46 }
 0x27e   : > { %2098 = vmatprep.subr.mxu1 %v2413_v1 }
 0x27f   : > { %2068 = vmatmul.mubr.msk.f32.vlgmr.msra.gmra.mxu0 %vm491_vm2, %v694_v40 }
 0x280   : > { %2172 = vmatprep.mubr.msk.f32.mxu0 %vm2414_vm0, %v2413_v1  ;;  %v857_v50 = vpop.permute.xlu1 %856 }
 0x281   : > { %2099 = vmatpush3.msra.mxu1 %v857_v50 }
 0x282   : > { %2100 = vmatprep.subr.mxu1 %v2413_v1 }
 0x2ff   : > { %v2921_v41 = vpop.f32.mrf.mxu0 }
 0x301   : > { %v2034_v42 = vpop.f32.mrf.mxu0 }
 0x33f   : > { %v827_v51 = vpop.f32.mrf.mxu0 }
 0x340   : > { %v828_v52 = vadd.f32 %v2831_v60, %v827_v51 }
 0x341   : > { %v2069_v53 = vpop.f32.mrf.mxu0 }
 0x342   : > { %831 = vmax.xlane.f32.xlu0 %v828_v52 }
 0x358   : > { %854 = vrot.lane.b32.xlu0 %v2852_v2, %s2415_s12 }
 0x35c   : > { %1010 = vrot.lane.b32.xlu0 %v2553_v6, %s2416_s11 }
 0x360   : > { %1006 = vrot.lane.b32.xlu0 %v2577_v9, %s2416_s11 }
 0x364   : > { %1002 = vrot.lane.b32.xlu0 %v2616_v16, %s2416_s11 }
 0x368   : > { %998 = vrot.lane.b32.xlu0 %v2652_v22, %s2416_s11 }
 0x36c   : > { %994 = vrot.lane.b32.xlu0 %v2661_v23, %s2416_s11 }
 0x370   : > { %990 = vrot.lane.b32.xlu0 %v2669_v24, %s2416_s11 }
 0x374   : > { %986 = vrot.lane.b32.xlu0 %v2677_v25, %s2416_s11 }
 0x378   : > { %982 = vrot.lane.b32.xlu0 %v2688_v27, %s2416_s11 }
 0x37c   : > { %1155 = vrot.lane.b32.xlu0 %v2569_v8, %s2416_s11 }
 0x380   : > { %1153 = vrot.lane.b32.xlu0 %v2580_v10, %s2416_s11 }
 0x384   : > { %1151 = vrot.lane.b32.xlu0 %v2590_v12, %s2416_s11 }
 0x388   : > { %1149 = vrot.lane.b32.xlu0 %v2601_v14, %s2416_s11 }
 0x38c   : > { %1147 = vrot.lane.b32.xlu0 %v2608_v15, %s2416_s11 }
 0x390   : > { %1145 = vrot.lane.b32.xlu0 %v2619_v17, %s2416_s11 }
 0x394   : > { %1143 = vrot.lane.b32.xlu0 %v2626_v18, %s2416_s11 }
 0x398   : > { %1141 = vrot.lane.b32.xlu0 %v2637_v20, %s2416_s11 }
 0x39c   : > { %1139 = vrot.lane.b32.xlu0 %v2644_v21, %s2416_s11 }
 0x3a0   : > { %1137 = vrot.lane.b32.xlu0 %v2835_v0, %s2416_s11 }
 0x3a4   : > { %1133 = vrot.lane.b32.xlu0 %v2749_v32, %s2416_s11 }
 0x3a8   : > { %1131 = vrot.lane.b32.xlu0 %v2754_v33, %s2416_s11 }
 0x3ac   : > { %1129 = vrot.lane.b32.xlu0 %v2759_v34, %s2416_s11 }
 0x3b0   : > { %1127 = vrot.lane.b32.xlu0 %v2764_v35, %s2416_s11 }
 0x3b4   : > { %1283 = vrot.lane.b32.xlu0 %v2583_v11, %s2417_s21 }
 0x3b8   : > { %1279 = vrot.lane.b32.xlu0 %v2564_v7, %s2417_s21 }
 0x3bc   : > { %1275 = vrot.lane.b32.xlu0 %v2598_v13, %s2417_s21 }
 0x3c0   : > { %1271 = vrot.lane.b32.xlu0 %v2634_v19, %s2417_s21 }
 0x3c4   : > { %1267 = vrot.lane.b32.xlu0 %v2683_v26, %s2417_s21 }
 0x3c8   : > { %1263 = vrot.lane.b32.xlu0 %v2699_v28, %s2417_s21  ;;  %v1013_v28 = vpop.permute.xlu1 %1012 }
 0x3cb   : > { %v832_v55 = vpop.xlane.xlu0 %831 }
 0x3cc   : > { %v833_v56 = vsub.f32 %v828_v52, %v832_v55  ;;  %1259 = vrot.lane.b32.xlu0 %v2712_v29, %s2417_s21 }
 0x3ce   : > { %v834_v11 = vmul.f32 1.442695, %v833_v56 }
 0x3cf   : > { %v855_v57 = vpop.permute.xlu0 %854 }
 0x3d0   : > { %2321 = vpow2.f32 %v834_v11  ;;  %1255 = vrot.lane.b32.xlu0 %v2725_v30, %s2417_s21  ;;  %2101 = vmatpush3.msra.mxu1 %v855_v57 }
 0x3d1   : > { %2105 = vmatprep.subr.mxu1 %v2413_v1 }
 0x3d3   : > { %v1011_v7 = vpop.permute.xlu0 %1010 }
 0x3d4   : > { %1251 = vrot.lane.b32.xlu0 %v2809_v54, %s2417_s21  ;;  %v1009_v54 = vpop.permute.xlu1 %1008 }
 0x3d7   : > { %v1007_v13 = vpop.permute.xlu0 %1006 }
 0x3d8   : > { %1408 = vrot.lane.b32.xlu0 %v2835_v0, %s2417_s21  ;;  %v1005_v61 = vpop.permute.xlu1 %1004 }
 0x3db   : > { %v1003_v19 = vpop.permute.xlu0 %1002 }
 0x3dc   : > { %v1001_v0 = vpop.permute.xlu1 %1000 }
 0x3dd   : > { %v2997_v26 = vpop.eup %2321 }
 0x3de   : > { %2103 = vmatmul.mubr.f32.vlgmr.msra.gmra.mxu1 %v2997_v26 }
 0x3df   : > { %2106 = vmatpush3.xpose.msk.msra.mxu1 %vm491_vm2, %v1013_v28  ;;  %v999_v29 = vpop.permute.xlu0 %998  ;;  %2137 = vmatprep.mubr.msk.f32.mxu1 %vm2414_vm0, %v2413_v1 }
 0x3e0   : > { %2107 = vmatprep.subr.mxu1 %v2413_v1  ;;  %v997_v5 = vpop.permute.xlu1 %996 }
 0x3e3   : > { %2108 = vmatpush3.xpose.msk.msra.mxu1 %vm491_vm2, %v1011_v7  ;;  %v995_v30 = vpop.permute.xlu0 %994 }
 0x3e4   : > { %2109 = vmatprep.subr.mxu1 %v2413_v1  ;;  %v993_v37 = vpop.permute.xlu1 %992 }
 0x3e7   : > { %2110 = vmatpush3.xpose.msk.msra.mxu1 %vm491_vm2, %v1009_v54  ;;  %v991_v58 = vpop.permute.xlu0 %990 }
 0x3e8   : > { %2111 = vmatprep.subr.mxu1 %v2413_v1  ;;  %v989_v40 = vpop.permute.xlu1 %988 }
 0x3eb   : > { %2112 = vmatpush3.xpose.msk.msra.mxu1 %vm491_vm2, %v1007_v13  ;;  %v987_v59 = vpop.permute.xlu0 %986 }
 0x3ec   : > { %2113 = vmatprep.subr.mxu1 %v2413_v1  ;;  %v985_v44 = vpop.permute.xlu1 %984 }
 0x3ef   : > { %2114 = vmatpush3.xpose.msk.msra.mxu1 %vm491_vm2, %v1005_v61  ;;  %v983_v62 = vpop.permute.xlu0 %982 }
 0x3f0   : > { %2115 = vmatprep.subr.mxu1 %v2413_v1  ;;  %v981_v49 = vpop.permute.xlu1 %980 }
 0x3f3   : > { %2116 = vmatpush3.xpose.msk.msra.mxu1 %vm491_vm2, %v1003_v19  ;;  %v1156_v63 = vpop.permute.xlu0 %1155 }
 0x3f4   : > { %2117 = vmatprep.subr.mxu1 %v2413_v1  ;;  %2141 = vmatpush3.msra.mxu0 %v1156_v63  ;;  %v1136_v53 = vpop.permute.xlu1 %1135 }
 0x3f5   : > { %2142 = vmatprep.subr.mxu0 %v2413_v1 }
 0x3f7   : > { %2118 = vmatpush3.xpose.msk.msra.mxu1 %vm491_vm2, %v1001_v0  ;;  %v1154_v3 = vpop.permute.xlu0 %1153 }
 0x3f8   : > { %2119 = vmatprep.subr.mxu1 %v2413_v1  ;;  %2143 = vmatpush3.msra.mxu0 %v1154_v3  ;;  %v1126_v11 = vpop.permute.xlu1 %1125 }
 0x3f9   : > { %2144 = vmatprep.subr.mxu0 %v2413_v1 }
 0x3fb   : > { %2120 = vmatpush3.xpose.msk.msra.mxu1 %vm491_vm2, %v999_v29  ;;  %v1152_v4 = vpop.permute.xlu0 %1151 }
 0x3fc   : > { %2121 = vmatprep.subr.mxu1 %v2413_v1  ;;  %2145 = vmatpush3.msra.mxu0 %v1152_v4 }
 0x3fd   : > { %2146 = vmatprep.subr.mxu0 %v2413_v1 }
 0x3ff   : > { %2122 = vmatpush3.xpose.msk.msra.mxu1 %vm491_vm2, %v997_v5  ;;  %v1150_v48 = vpop.permute.xlu0 %1149 }
 0x400   : > { %2123 = vmatprep.subr.mxu1 %v2413_v1  ;;  %2147 = vmatpush3.msra.mxu0 %v1150_v48 }
 0x401   : > { %2148 = vmatprep.subr.mxu0 %v2413_v1 }
 0x403   : > { %2124 = vmatpush3.xpose.msk.msra.mxu1 %vm491_vm2, %v995_v30  ;;  %v1148_v36 = vpop.permute.xlu0 %1147 }
 0x404   : > { %2125 = vmatprep.subr.mxu1 %v2413_v1  ;;  %2149 = vmatpush3.msra.mxu0 %v1148_v36 }
 0x405   : > { %2150 = vmatprep.subr.mxu0 %v2413_v1 }
 0x407   : > { %2126 = vmatpush3.xpose.msk.msra.mxu1 %vm491_vm2, %v993_v37  ;;  %v1146_v38 = vpop.permute.xlu0 %1145 }
 0x408   : > { %2127 = vmatprep.subr.mxu1 %v2413_v1  ;;  %2151 = vmatpush3.msra.mxu0 %v1146_v38 }
 0x409   : > { %2152 = vmatprep.subr.mxu0 %v2413_v1 }
 0x40b   : > { %2128 = vmatpush3.xpose.msk.msra.mxu1 %vm491_vm2, %v991_v58  ;;  %v1144_v39 = vpop.permute.xlu0 %1143 }
 0x40c   : > { %2129 = vmatprep.subr.mxu1 %v2413_v1  ;;  %2153 = vmatpush3.msra.mxu0 %v1144_v39 }
 0x40d   : > { %2154 = vmatprep.subr.mxu0 %v2413_v1 }
 0x40f   : > { %2130 = vmatpush3.xpose.msk.msra.mxu1 %vm491_vm2, %v989_v40  ;;  %v1142_v42 = vpop.permute.xlu0 %1141 }
 0x410   : > { %2131 = vmatprep.subr.mxu1 %v2413_v1  ;;  %2155 = vmatpush3.msra.mxu0 %v1142_v42 }
 0x411   : > { %2156 = vmatprep.subr.mxu0 %v2413_v1 }
 0x413   : > { %2132 = vmatpush3.xpose.msk.msra.mxu1 %vm491_vm2, %v987_v59  ;;  %v1140_v43 = vpop.permute.xlu0 %1139 }
 0x414   : > { %2133 = vmatprep.subr.mxu1 %v2413_v1  ;;  %2157 = vmatpush3.msra.mxu0 %v1140_v43 }
 0x415   : > { %2158 = vmatprep.subr.mxu0 %v2413_v1 }
 0x417   : > { %2134 = vmatpush3.xpose.msk.msra.mxu1 %vm491_vm2, %v985_v44  ;;  %v1138_v45 = vpop.permute.xlu0 %1137 }
 0x418   : > { %2135 = vmatprep.subr.mxu1 %v2413_v1  ;;  %2159 = vmatpush3.msra.mxu0 %v1138_v45 }
 0x419   : > { %2160 = vmatprep.subr.mxu0 %v2413_v1 }
 0x41a   : > { %2161 = vmatpush3.msra.mxu0 %v1136_v53 }
 0x41b   : > { %2136 = vmatpush3.xpose.msk.msra.mxu1 %vm491_vm2, %v983_v62  ;;  %v1134_v46 = vpop.permute.xlu0 %1133  ;;  %2162 = vmatprep.subr.mxu0 %v2413_v1 }
 0x41c   : > { %2210 = vmatprep.subr.mxu1 %v2413_v1  ;;  %2163 = vmatpush3.msra.mxu0 %v1134_v46 }
 0x41d   : > { %2164 = vmatprep.subr.mxu0 %v2413_v1 }
 0x41e   : > { %2138 = vmatmul.mubr.msk.f32.vlgmr.msra.gmra.mxu1 %vm491_vm2, %v981_v49 }
 0x41f   : > { %2242 = vmatprep.mubr.msk.f32.mxu1 %vm2414_vm0, %v2413_v1  ;;  %v1132_v50 = vpop.permute.xlu0 %1131 }
 0x420   : > { %2165 = vmatpush3.msra.mxu0 %v1132_v50 }
 0x421   : > { %2166 = vmatprep.subr.mxu0 %v2413_v1 }
 0x423   : > { %v1130_v55 = vpop.permute.xlu0 %1129 }
 0x424   : > { %2167 = vmatpush3.msra.mxu0 %v1130_v55 }
 0x425   : > { %2168 = vmatprep.subr.mxu0 %v2413_v1 }
 0x427   : > { %v1128_v56 = vpop.permute.xlu0 %1127 }
 0x428   : > { %2169 = vmatpush3.msra.mxu0 %v1128_v56 }
 0x429   : > { %2170 = vmatprep.subr.mxu0 %v2413_v1 }
 0x42a   : > { %2171 = vmatpush3.msra.mxu0 %v1126_v11  ;;  %v1525_v11 = vld [vmem:[%s3235_s6 + $0x10] sm:$0xff] }
 0x42b   : > { %2175 = vmatprep.subr.mxu0 %v2413_v1 }
 0x49e   : > { %v3047_v51 = vpop.f32.mrf.mxu1 }
 0x4a0   : > { %v2104_v52 = vpop.f32.mrf.mxu1 }
 0x4de   : > { %v1114_v57 = vpop.f32.mrf.mxu1 }
 0x4df   : > { %v1115_v7 = vadd.f32 %v2831_v60, %v1114_v57  ;;  %v1524_v57 = vld [vmem:[%s3235_s6 + $0x8] sm:$0xff] }
 0x4e0   : > { %v2139_v13 = vpop.f32.mrf.mxu1 }
 0x4e1   : > { %1118 = vmax.xlane.f32.xlu1 %v1115_v7 }
 0x4f2   : > { %1281 = vrot.lane.b32.xlu1 %v2553_v6, %s2417_s21 }
 0x4f6   : > { %1277 = vrot.lane.b32.xlu1 %v2577_v9, %s2417_s21 }
 0x4fa   : > { %1273 = vrot.lane.b32.xlu1 %v2616_v16, %s2417_s21 }
 0x4fe   : > { %1269 = vrot.lane.b32.xlu1 %v2652_v22, %s2417_s21 }
 0x502   : > { %1265 = vrot.lane.b32.xlu1 %v2661_v23, %s2417_s21 }
 0x506   : > { %1261 = vrot.lane.b32.xlu1 %v2669_v24, %s2417_s21 }
 0x50a   : > { %1257 = vrot.lane.b32.xlu1 %v2677_v25, %s2417_s21 }
 0x50e   : > { %1253 = vrot.lane.b32.xlu1 %v2688_v27, %s2417_s21 }
 0x512   : > { %1426 = vrot.lane.b32.xlu1 %v2569_v8, %s2417_s21 }
 0x516   : > { %1424 = vrot.lane.b32.xlu1 %v2580_v10, %s2417_s21 }
 0x51a   : > { %1422 = vrot.lane.b32.xlu1 %v2590_v12, %s2417_s21 }
 0x51e   : > { %1420 = vrot.lane.b32.xlu1 %v2601_v14, %s2417_s21 }
 0x522   : > { %1418 = vrot.lane.b32.xlu1 %v2608_v15, %s2417_s21 }
 0x526   : > { %1416 = vrot.lane.b32.xlu1 %v2619_v17, %s2417_s21  ;;  %v1284_v17 = vpop.permute.xlu0 %1283 }
 0x52a   : > { %1414 = vrot.lane.b32.xlu1 %v2626_v18, %s2417_s21 }
 0x52e   : > { %1412 = vrot.lane.b32.xlu1 %v2637_v20, %s2417_s21 }
 0x532   : > { %1410 = vrot.lane.b32.xlu1 %v2644_v21, %s2417_s21  ;;  %v1280_v21 = vpop.permute.xlu0 %1279 }
 0x536   : > { %1406 = vrot.lane.b32.xlu1 %v2744_v31, %s2417_s21  ;;  %v1276_v24 = vpop.permute.xlu0 %1275 }
 0x53a   : > { %1404 = vrot.lane.b32.xlu1 %v2749_v32, %s2417_s21  ;;  %v1272_v31 = vpop.permute.xlu0 %1271 }
 0x53e   : > { %1402 = vrot.lane.b32.xlu1 %v2754_v33, %s2417_s21 }
 0x542   : > { %1400 = vrot.lane.b32.xlu1 %v2759_v34, %s2417_s21  ;;  %v1268_v34 = vpop.permute.xlu0 %1267 }
 0x546   : > { %1398 = vrot.lane.b32.xlu1 %v2764_v35, %s2417_s21  ;;  %v1264_v19 = vpop.permute.xlu0 %1263 }
 0x54a   : > { %v1260_v29 = vpop.permute.xlu0 %1259 }
 0x54e   : > { %v1256_v54 = vpop.permute.xlu0 %1255 }
 0x552   : > { %v1252_v58 = vpop.permute.xlu0 %1251 }
 0x556   : > { %v1409_v36 = vpop.permute.xlu0 %1408 }
 0x56a   : > { %836 = vadd.xlane.f32.xlu1 %v2997_v26  ;;  %v1119_v6 = vpop.xlane.xlu1 %1118 }
 0x56b   : > { %v1120_v8 = vsub.f32 %v1115_v7, %v1119_v6  ;;  %v1523_v7 = vld [vmem:[%s3235_s6] sm:$0xff] }
 0x56d   : > { %v1121_v9 = vmul.f32 1.442695, %v1120_v8 }
 0x56e   : > { %618 = vadd.xlane.f32.xlu1 %v2870_v47  ;;  %v1282_v10 = vpop.permute.xlu1 %1281 }
 0x56f   : > { %2323 = vpow2.f32 %v1121_v9 }
 0x572   : > { %v1278_v12 = vpop.permute.xlu1 %1277 }
 0x576   : > { %v1274_v14 = vpop.permute.xlu1 %1273 }
 0x57a   : > { %v1270_v15 = vpop.permute.xlu1 %1269 }
 0x57c   : > { %v3102_v16 = vpop.eup %2323 }
 0x57d   : > { %2173 = vmatmul.mubr.f32.vlgmr.msra.gmra.mxu0 %v3102_v16 }
 0x57e   : > { %2176 = vmatpush3.xpose.msk.msra.mxu0 %vm491_vm2, %v1284_v17  ;;  %v1266_v18 = vpop.permute.xlu1 %1265  ;;  %2207 = vmatprep.mubr.msk.f32.mxu0 %vm2414_vm0, %v2413_v1 }
 0x57f   : > { %2177 = vmatprep.subr.mxu0 %v2413_v1 }
 0x582   : > { %2178 = vmatpush3.xpose.msk.msra.mxu0 %vm491_vm2, %v1282_v10  ;;  %v1262_v20 = vpop.permute.xlu1 %1261 }
 0x583   : > { %2179 = vmatprep.subr.mxu0 %v2413_v1 }
 0x586   : > { %2180 = vmatpush3.xpose.msk.msra.mxu0 %vm491_vm2, %v1280_v21  ;;  %v1258_v22 = vpop.permute.xlu1 %1257 }
 0x587   : > { %2181 = vmatprep.subr.mxu0 %v2413_v1 }
 0x58a   : > { %2182 = vmatpush3.xpose.msk.msra.mxu0 %vm491_vm2, %v1278_v12  ;;  %v1254_v23 = vpop.permute.xlu1 %1253 }
 0x58b   : > { %2183 = vmatprep.subr.mxu0 %v2413_v1 }
 0x58e   : > { %2184 = vmatpush3.xpose.msk.msra.mxu0 %vm491_vm2, %v1276_v24  ;;  %v1427_v25 = vpop.permute.xlu1 %1426 }
 0x58f   : > { %2185 = vmatprep.subr.mxu0 %v2413_v1  ;;  %2211 = vmatpush3.msra.mxu1 %v1427_v25 }
 0x590   : > { %2212 = vmatprep.subr.mxu1 %v2413_v1 }
 0x592   : > { %2186 = vmatpush3.xpose.msk.msra.mxu0 %vm491_vm2, %v1274_v14  ;;  %v1425_v27 = vpop.permute.xlu1 %1424 }
 0x593   : > { %2187 = vmatprep.subr.mxu0 %v2413_v1  ;;  %2213 = vmatpush3.msra.mxu1 %v1425_v27 }
 0x594   : > { %2214 = vmatprep.subr.mxu1 %v2413_v1 }
 0x596   : > { %2188 = vmatpush3.xpose.msk.msra.mxu0 %vm491_vm2, %v1272_v31  ;;  %v1423_v32 = vpop.permute.xlu1 %1422 }
 0x597   : > { %2189 = vmatprep.subr.mxu0 %v2413_v1  ;;  %2215 = vmatpush3.msra.mxu1 %v1423_v32 }
 0x598   : > { %2216 = vmatprep.subr.mxu1 %v2413_v1 }
 0x59a   : > { %2190 = vmatpush3.xpose.msk.msra.mxu0 %vm491_vm2, %v1270_v15  ;;  %v1421_v33 = vpop.permute.xlu1 %1420 }
 0x59b   : > { %2191 = vmatprep.subr.mxu0 %v2413_v1  ;;  %2217 = vmatpush3.msra.mxu1 %v1421_v33 }
 0x59c   : > { %2218 = vmatprep.subr.mxu1 %v2413_v1 }
 0x59e   : > { %2192 = vmatpush3.xpose.msk.msra.mxu0 %vm491_vm2, %v1268_v34  ;;  %v1419_v35 = vpop.permute.xlu1 %1418 }
 0x59f   : > { %2193 = vmatprep.subr.mxu0 %v2413_v1  ;;  %2219 = vmatpush3.msra.mxu1 %v1419_v35 }
 0x5a0   : > { %2220 = vmatprep.subr.mxu1 %v2413_v1 }
 0x5a2   : > { %2194 = vmatpush3.xpose.msk.msra.mxu0 %vm491_vm2, %v1266_v18  ;;  %v1417_v47 = vpop.permute.xlu1 %1416 }
 0x5a3   : > { %2195 = vmatprep.subr.mxu0 %v2413_v1  ;;  %2221 = vmatpush3.msra.mxu1 %v1417_v47 }
 0x5a4   : > { %2222 = vmatprep.subr.mxu1 %v2413_v1 }
 0x5a6   : > { %2196 = vmatpush3.xpose.msk.msra.mxu0 %vm491_vm2, %v1264_v19  ;;  %v1415_v26 = vpop.permute.xlu1 %1414 }
 0x5a7   : > { %2197 = vmatprep.subr.mxu0 %v2413_v1  ;;  %2223 = vmatpush3.msra.mxu1 %v1415_v26 }
 0x5a8   : > { %2224 = vmatprep.subr.mxu1 %v2413_v1 }
 0x5aa   : > { %2198 = vmatpush3.xpose.msk.msra.mxu0 %vm491_vm2, %v1262_v20  ;;  %v1413_v28 = vpop.permute.xlu1 %1412 }
 0x5ab   : > { %2199 = vmatprep.subr.mxu0 %v2413_v1  ;;  %2225 = vmatpush3.msra.mxu1 %v1413_v28 }
 0x5ac   : > { %2226 = vmatprep.subr.mxu1 %v2413_v1 }
 0x5ae   : > { %2200 = vmatpush3.xpose.msk.msra.mxu0 %vm491_vm2, %v1260_v29  ;;  %v1411_v30 = vpop.permute.xlu1 %1410 }
 0x5af   : > { %2201 = vmatprep.subr.mxu0 %v2413_v1  ;;  %2227 = vmatpush3.msra.mxu1 %v1411_v30 }
 0x5b0   : > { %2228 = vmatprep.subr.mxu1 %v2413_v1 }
 0x5b1   : > { %2229 = vmatpush3.msra.mxu1 %v1409_v36 }
 0x5b2   : > { %2202 = vmatpush3.xpose.msk.msra.mxu0 %vm491_vm2, %v1258_v22  ;;  %v1407_v59 = vpop.permute.xlu1 %1406  ;;  %2230 = vmatprep.subr.mxu1 %v2413_v1 }
 0x5b3   : > { %2203 = vmatprep.subr.mxu0 %v2413_v1  ;;  %2231 = vmatpush3.msra.mxu1 %v1407_v59 }
 0x5b4   : > { %2232 = vmatprep.subr.mxu1 %v2413_v1 }
 0x5b6   : > { %2204 = vmatpush3.xpose.msk.msra.mxu0 %vm491_vm2, %v1256_v54  ;;  %v1405_v61 = vpop.permute.xlu1 %1404 }
 0x5b7   : > { %2205 = vmatprep.subr.mxu0 %v2413_v1  ;;  %2233 = vmatpush3.msra.mxu1 %v1405_v61 }
 0x5b8   : > { %2234 = vmatprep.subr.mxu1 %v2413_v1 }
 0x5ba   : > { %2206 = vmatpush3.xpose.msk.msra.mxu0 %vm491_vm2, %v1254_v23  ;;  %v1403_v62 = vpop.permute.xlu1 %1402 }
 0x5bb   : > { %2235 = vmatpush3.msra.mxu1 %v1403_v62 }
 0x5bc   : > { %2236 = vmatprep.subr.mxu1 %v2413_v1 }
 0x5bd   : > { %2208 = vmatmul.mubr.msk.f32.vlgmr.msra.gmra.mxu0 %vm491_vm2, %v1252_v58 }
 0x5be   : > { %v1401_v63 = vpop.permute.xlu1 %1400 }
 0x5bf   : > { %2237 = vmatpush3.msra.mxu1 %v1401_v63 }
 0x5c0   : > { %2238 = vmatprep.subr.mxu1 %v2413_v1 }
 0x5c2   : > { %v1399_v0 = vpop.permute.xlu1 %1398 }
 0x5c3   : > { %2239 = vmatpush3.msra.mxu1 %v1399_v0 }
 0x5c4   : > { %2240 = vmatprep.subr.mxu1 %v2413_v1 }
 0x5f3   : > { %v837_v3 = vpop.xlane.xlu1 %836 }
 0x5f7   : > { %v619_v4 = vpop.xlane.xlu1 %618 }
 0x5f8   : > { %2325 = vrcp.f32 %v619_v4 }
 0x605   : > { %v2326_v5 = vpop.eup %2325 }
 0x606   : > { %v691_v48 = vmul.f32 %v2326_v5, %v2921_v41 }
 0x608   : > { %692 = vst.msk [vmem:[#allocation2] sm:$0xff] %vm491_vm2, %v691_v48 }
 0x63d   : > { %v1239_v37 = vpop.f32.mrf.mxu0 }
 0x63f   : > { %v2174_v38 = vpop.f32.mrf.mxu0 }
 0x67d   : > { %v1385_v41 = vpop.f32.mrf.mxu0 }
 0x67e   : > { %v1386_v39 = vadd.f32 %v2831_v60, %v1385_v41 }
 0x67f   : > { %v2209_v40 = vpop.f32.mrf.mxu0 }
 0x680   : > { %1389 = vmax.xlane.f32.xlu0 %v1386_v39 }
 0x696   : > { %1396 = vrot.lane.b32.xlu0 %v2852_v2, %s2417_s21  ;;  %s346_s21 = sand.u32 1, %s2395_s28  }
 0x697   : > { %s1609_s19 = scalar_lea.sflag [#allocation4], %s346_s21 }
 0x6b5   : > { %1123 = vadd.xlane.f32.xlu0 %v3102_v16 }
 0x709   : > { %v1390_v42 = vpop.xlane.xlu0 %1389 }
 0x70a   : > { %v1391_v43 = vsub.f32 %v1386_v39, %v1390_v42 }
 0x70c   : > { %v1392_v44 = vmul.f32 1.442695, %v1391_v43 }
 0x70d   : > { %v1397_v45 = vpop.permute.xlu0 %1396 }
 0x70e   : > { %2327 = vpow2.f32 %v1392_v44  ;;  %2241 = vmatpush3.msra.mxu1 %v1397_v45 }
 0x70f   : > { %2245 = vmatprep.subr.mxu1 %v2413_v1  ;;  %2329 = vrcp.f32 %v837_v3 }
 0x71b   : > { %v2328_v49 = vpop.eup %2327 }
 0x71c   : > { %1394 = vadd.xlane.f32.xlu0 %v2328_v49  ;;  %2243 = vmatmul.mubr.f32.vlgmr.msra.gmra.mxu1 %v2328_v49  ;;  %v2330_v60 = vpop.eup %2329 }
 0x71d   : > { %2253 = vmatprep.mubr.msk.f32.mxu1 %vm2414_vm0, %v2413_v1  ;;  %v973_v2 = vmul.f32 %v2330_v60, %v3047_v51  ;;  %v1526_v51 = vld [vmem:[%s3235_s6 + $0x18] sm:$0xff] }
 0x71e   : > { %2246 = vmatpush3.msra.mxu1 %v1526_v51 }
 0x71f   : > { %2247 = vmatprep.subr.mxu1 %v2413_v1 }
 0x720   : > { %2248 = vmatpush3.msra.mxu1 %v1525_v11 }
 0x721   : > { %2249 = vmatprep.subr.mxu1 %v2413_v1 }
 0x722   : > { %2250 = vmatpush3.msra.mxu1 %v1524_v57 }
 0x723   : > { %2251 = vmatprep.subr.mxu1 %v2413_v1  ;;  %v1800_v1 = vld [vmem:[%s3236_s7] ss:$0 sm:$0xff] }
 0x724   : > { %2252 = vmatpush3.msra.mxu1 %v1523_v7 }
 0x732   : > { %975 = vrot.lane.b32.xlu0 %v973_v2, %s2418_s22  ;;  %s1723_s22 = sshll.u32 %s346_s21, 3 }
 0x733   : > { %s348_s26 = scalar_lea.vmem [#allocation3], %s1723_s22  ;;  %s2339_s22 = sshll.u32 %s2421_s30, 4  ;;  %s2340_s22 = int_to_ptr.vmem [resolvable:$false] %s2339_s22 }
 0x734   : > { %s1623_s12 = sshll.u32 %s348_s26, 4  ;;  %s1624_s12 = int_to_ptr.vmem [resolvable:$true] %s1623_s12 }
 0x735   : > { %p2342_p1 = scmp.lt.s32.totalorder %s1624_s12, %s2340_s22 }
 0x73e   : > { %v1124_v46 = vpop.xlane.xlu0 %1123 }
 0x73f   : > { %2331 = vrcp.f32 %v1124_v46 }
 0x74c   : > { %v2332_v50 = vpop.eup %2331 }
 0x74d   : > { %v1244_v52 = vmul.f32 %v2332_v50, %v1239_v37 }
 0x74f   : > { %1246 = vrot.lane.b32.xlu1 %v1244_v52, %s2419_s24  ;;  %s2341_s24 = scalar_lea.vmem %s2340_s22, 256 }
 0x7a5   : > { %v1395_v53 = vpop.xlane.xlu0 %1394 }
 0x7a6   : > { %2333 = vrcp.f32 %v1395_v53 }
 0x7a9   : > { %v976_v55 = vpop.permute.xlu0 %975 }
 0x7aa   : > { %979 = vst.msk [vmem:[#allocation2] sm:$0xff] %vm978_vm3, %v976_v55 }
 0x7b3   : > { %v2334_v13 = vpop.eup %2333 }
 0x7c1   : > { %v1247_v56 = vpop.permute.xlu1 %1246 }
 0x7c2   : > { %1250 = vst.msk [vmem:[#allocation2] sm:$0xff] %vm1249_vm4, %v1247_v56 }
 0x7dc   : > { %v1510_v6 = vpop.f32.mrf.mxu1 }
 0x7dd   : > { %v1515_v8 = vmul.f32 %v2334_v13, %v1510_v6 }
 0x7de   : > { %v2244_v9 = vpop.f32.mrf.mxu1 }
 0x7df   : > { %1517 = vrot.lane.b32.xlu1 %v1515_v8, %s2420_s20  ;;  %s2335_s20 = scalar_lea.vmem %s1624_s12, 128 }
 0x7e0   : > { %p2336_p12 = scmp.ne.s32.totalorder %s1624_s12, %s2335_s20  ;;  %p2343_p2 = scmp.lt.s32.totalorder %s2341_s24, %s2335_s20 }
 0x7e2   : > { %p2337_p13 = pnand %p2336_p12, %p2507_p4  ;;  %p2344_p3 = por %p2343_p2, %p2342_p1 }
 0x7e4   : > { %p2338_p0 = pneg %p2337_p13 }
 0x7e6   : > { %p2345_p5 = pnand %p2344_p3, %p2338_p0 }
 0x851   : > { %v1518_v10 = vpop.permute.xlu1 %1517 }
 0x852   : > { %1521 = vst.msk [vmem:[#allocation2] sm:$0xff] %vm1520_vm5, %v1518_v10 }
 0x859   : > { %v1522_v12 = vld [vmem:[#allocation2] sm:$0xff] }
 0x85a   : > { %2254 = vmatmul.mubr.msk.f32.vlgmr.msra.gmra.mxu1 %vm378_vm1, %v1522_v12 }
 0x91a   : > { %v1603_v14 = vpop.f32.mrf.mxu1 }
 0x91b   : > { %v1604_v15 = vadd.f32 %v1800_v1, %v1603_v14 }
 0x91c   : > { %v2255_v16 = vpop.f32.mrf.mxu1 }
 0x91d   : > { %1607 = vst.msk [vmem:[%s348_s26] sm:$0xff] %vm378_vm1, %v1604_v15 }
 0x91e   : > { %2348 = shalt.err (!%p2345_p5)
}
 0x91f   : > { %s2349_s23 = scalar_lea.hbm %s3188_s16, 128  ;;  %s2353_s26 = scalar_lea.hbm %s3237_s8, 256 }
 0x920   : > { %p2350_p6 = scmp.ne.s32.totalorder %s3188_s16, %s2349_s23  ;;  %p2354_p10 = scmp.lt.s32.totalorder %s3188_s16, %s3237_s8 }
 0x921   : > { %p2355_p11 = scmp.lt.s32.totalorder %s2353_s26, %s2349_s23 }
 0x922   : > { %p2351_p7 = pnand %p2350_p6, %p2507_p4 }
 0x923   : > { %p2356_p12 = por %p2355_p11, %p2354_p10 }
 0x924   : > { %p2352_p9 = pneg %p2351_p7 }
 0x926   : > { %p2357_p13 = pnand %p2356_p12, %p2352_p9 }
 0x928   : > { %2360 = shalt.err (!%p2357_p13)
}
 0x929   : > { %2256 = dma.vmem_to_hbm [thread:$0]  (%p2507_p4), %s1624_s12, 128, %s3188_s16, %s1609_s19  }
 0x92a PF: > { %p2262_p0 = scmp.ge.s32.totalorder %s2411_s10, 2  ;;  %s1635_s20 = sand.u32 1, %s2391_s27  }
 0x92b   : > { %s1636_s30 = scalar_lea.sflag [#allocation4], %s1635_s20 }
 0x92c   : > { %p2259_p1 = pnand %p2262_p0, %p2514_p8 }
 0x92e   : > { %p2260_p2 = pneg %p2259_p1 }
 0x930   : > { %2386 = dma.done.wait (%p2260_p2), %s1636_s30, 128  }
 0x931   : > { %2388 = vsyncadd (%p2260_p2), %s1636_s30, 4294967168  ;;  %s21_s10 = sadd.s32 1, %s2411_s10   ;;  %s3240_s27 = smov %s2395_s28 }
 0x932   : > { %p18_p3 = scmp.ge.s32.totalorder %s21_s10, 4   ;;  %s3241_s28 = smov %s2399_s29 }
 0x933   : > { %s3242_s29 = smov %s2520_s18  ;;  %s3243_s30 = smov %s2407_s9 }
 0x934   : > { %s3244_s9 = smov %s3246_s13  ;;  %20 = sbr.rel (!%p18_p3) target bundleno = 4 (0x4), region = 93 }
 0x939   :  { %1641 = vsyncpa [#allocation4], 1 }
 0x93a   :  { %1643 = vsyncpa [#allocation4 + $0x1], 1 }

</bundles_post_ra>
